<compile_context>
chip_gen: v5e
topology: v5e:2x2
jax: 0.10.0
libtpu: 0.0.40
codegen_flags: <defaults>
</compile_context>

<pallas_src>
import functools
import jax
import jax.numpy as jnp
from jax.experimental import pallas as pl
from jax.experimental.pallas import tpu as pltpu

MATMUL_DTYPE = jnp.bfloat16  # MXU operand dtype; accumulation/state stay f32


# ----------------------------------------------------------------------------
# Fused kernel: interleaved bidirectional LSTM recurrence + dense head.
# ----------------------------------------------------------------------------
def _bilstm_dense_kernel(xc_ref, len_ref, wih_ref, whh_ref, b_ref,
                         wd_ref, bd_ref, out_ref):
    """
    xc_ref  : (T*Bp, 2E) bf16  row block s = [x_fwd[t=s] | x_bwd[t=T-1-s]] per batch row
    len_ref : (Bp, 1)  int32   sequence lengths (padded rows have length 0)
    wih_ref : (2E, 8H) bf16    block-diag input->gates, gate-major interleaved columns
                               [i_f i_b | f_f f_b | g_f g_b | o_f o_b]
    whh_ref : (2H, 8H) bf16    block-diag hidden->gates (rows = [h_f | h_b])
    b_ref   : (1, 8H)  f32     combined b_ih + b_hh, both directions, interleaved
    wd_ref  : (2H, Np) bf16    dense weights acting on [h_f | h_b], N padded to 128
    bd_ref  : (1, Np)  f32     dense bias (padded)
    out_ref : (Bp, Np) f32     padded logits
    """
    Bp = len_ref.shape[0]
    H2 = whh_ref.shape[0]            # 2H  (both directions)
    H = H2 // 2
    T = xc_ref.shape[0] // Bp

    # Hoisted input projection for ALL timesteps and BOTH directions: one MXU call.
    # TODO(synk): for production T/B/E (x_comb >> VMEM) keep x_comb in HBM
    # (memory_space=pl.ANY) and time-chunk this GEMM with pltpu.emit_pipeline so only
    # a sliding window of gx is live (budget against 64 MiB on v7x).
    gx = (jnp.dot(xc_ref[...], wih_ref[...], preferred_element_type=jnp.float32)
          + b_ref[...])                                           # (T*Bp, 8H) f32

    # Hoisted pack_padded keep-mask, (T, Bp, 2H):
    #   forward state columns (col < H) update while s        < len
    #   backward state columns (col >= H) update while T-1-s  < len
    s_col = jax.lax.broadcasted_iota(jnp.int32, (T, H2), 0)       # step index
    lane = jax.lax.broadcasted_iota(jnp.int32, (T, H2), 1)        # state column index
    t_eff = jnp.where(lane < H, s_col, (T - 1) - s_col)           # (T, 2H)
    keep_all = t_eff[:, None, :] < len_ref[...][None, :, :]       # (T, Bp, 2H) bool

    whh = whh_ref[...]                                            # (2H, 8H) bf16
    h = jnp.zeros((Bp, H2), jnp.float32)                          # [h_f | h_b]
    c = jnp.zeros((Bp, H2), jnp.float32)                          # [c_f | c_b]

    # Static unroll (T small). Per step the dependent critical path is one
    # (Bp,2H)x(2H,8H) MXU call + EUP gate math covering BOTH directions at once.
    # TODO(synk): switch to lax.fori_loop(unroll=2..4) once T grows to bound vreg
    # live ranges; on v7x alternatively split directions across a 2-TC core_map.
    for s in range(T):
        gates = gx[s * Bp:(s + 1) * Bp, :] + jnp.dot(
            h.astype(whh.dtype), whh, preferred_element_type=jnp.float32)  # (Bp, 8H)

        i_g = jax.nn.sigmoid(gates[:, 0 * H2:1 * H2])
        f_g = jax.nn.sigmoid(gates[:, 1 * H2:2 * H2])
        g_g = jnp.tanh(gates[:, 2 * H2:3 * H2])
        o_g = jax.nn.sigmoid(gates[:, 3 * H2:4 * H2])

        c_new = f_g * c + i_g * g_g
        h_new = o_g * jnp.tanh(c_new)

        keep = keep_all[s]                                        # (Bp, 2H) bool
        c = jnp.where(keep, c_new, c)
        h = jnp.where(keep, h_new, h)

    # Fused dense head, lane-dense store: [h_f | h_b] @ Wd (N padded to 128).
    out = (jnp.dot(h.astype(wd_ref.dtype), wd_ref[...],
                   preferred_element_type=jnp.float32) + bd_ref[...])
    out_ref[...] = out.astype(out_ref.dtype)


def bilstm_dense(x_comb, len_col, wih_comb, whh_comb, b_comb, wd_pad, bd_pad, b_padded):
    n_pad = wd_pad.shape[1]
    vmem_spec = pl.BlockSpec(memory_space=pltpu.MemorySpace.VMEM)
    return pl.pallas_call(
        _bilstm_dense_kernel,
        out_shape=jax.ShapeDtypeStruct((b_padded, n_pad), jnp.float32),
        in_specs=[vmem_spec] * 7,
        out_specs=vmem_spec,
        compiler_params=pltpu.CompilerParams(vmem_limit_bytes=32 * 1024 * 1024),
    )(x_comb, len_col, wih_comb, whh_comb, b_comb, wd_pad, bd_pad)


# ----------------------------------------------------------------------------
# Weight re-layout: block-diagonal / gate-interleaved tensors for the kernel.
# ----------------------------------------------------------------------------
def _interleave_gate_cols(wf, wb, H):
    """wf, wb: (K, 4H) with gate column blocks [i f g o].
    Returns (K, 8H) with layout [i_f i_b | f_f f_b | g_f g_b | o_f o_b]."""
    K = wf.shape[0]
    return jnp.concatenate(
        [wf.reshape(K, 4, H), wb.reshape(K, 4, H)], axis=-1).reshape(K, 8 * H)


def prepare_kernel_params(params, matmul_dtype=MATMUL_DTYPE):
    H = params["whh"].shape[2]
    wih_f_t, wih_b_t = params["wih"][0].T, params["wih"][1].T      # (E, 4H)
    whh_f_t, whh_b_t = params["whh"][0].T, params["whh"][1].T      # (H, 4H)
    zeros_e = jnp.zeros_like(wih_f_t)
    zeros_h = jnp.zeros_like(whh_f_t)

    # Block-diagonal: forward input rows feed only forward gate halves, etc.
    wih_comb = jnp.concatenate(
        [_interleave_gate_cols(wih_f_t, zeros_e, H),
         _interleave_gate_cols(zeros_e, wih_b_t, H)], axis=0)      # (2E, 8H)
    whh_comb = jnp.concatenate(
        [_interleave_gate_cols(whh_f_t, zeros_h, H),
         _interleave_gate_cols(zeros_h, whh_b_t, H)], axis=0)      # (2H, 8H)

    b_f = (params["b_ih"][0] + params["b_hh"][0])[None, :]
    b_b = (params["b_ih"][1] + params["b_hh"][1])[None, :]
    b_comb = _interleave_gate_cols(b_f, b_b, H)                    # (1, 8H)

    N = params["dense_w"].shape[0]
    n_pad = ((N + 127) // 128) * 128                               # lane-dense output
    wd = params["dense_w"].T                                       # (2H, N), rows 0:H on h_f
    wd_pad = jnp.zeros((2 * H, n_pad), jnp.float32).at[:, :N].set(wd)
    bd_pad = jnp.zeros((1, n_pad), jnp.float32).at[0, :N].set(params["dense_b"])

    return {
        "emb": params["emb"],
        "wih_comb": wih_comb.astype(matmul_dtype),
        "whh_comb": whh_comb.astype(matmul_dtype),
        "b_comb": b_comb.astype(jnp.float32),
        "wd_pad": wd_pad.astype(matmul_dtype),
        "bd_pad": bd_pad,
        "num_output": N,
    }


# ----------------------------------------------------------------------------
# Full model forward (mirrors LSTM.forward of the PyTorch module, eval mode)
# ----------------------------------------------------------------------------
def lstm_model_forward(kparams, text_index, text_lengths):
    # Embedding lookup (gather) stays in plain JAX glue; padding_idx=0 row is zero.
    embedded = jnp.take(kparams["emb"], text_index, axis=0)           # (B, T, E)
    B, T = text_index.shape
    x_tbe = jnp.transpose(embedded, (1, 0, 2)).astype(jnp.float32)    # (T, B, E)

    # Pad batch to a multiple of 8 (vreg sublanes) so per-step gx slices are aligned.
    b_pad = ((B + 7) // 8) * 8
    pad = b_pad - B
    if pad:
        x_tbe = jnp.pad(x_tbe, ((0, 0), (0, pad), (0, 0)))
    lengths = text_lengths.astype(jnp.int32)
    if pad:
        lengths = jnp.pad(lengths, (0, pad))                          # padded rows: len 0
    len_col = lengths[:, None]                                        # (Bp, 1)

    # Combined fwd/rev input: row block s = [x[t=s] | x[t=T-1-s]] -> one projection GEMM.
    x_comb = jnp.concatenate([x_tbe, x_tbe[::-1]], axis=-1)           # (T, Bp, 2E)
    x_comb = x_comb.reshape(T * b_pad, -1).astype(kparams["wih_comb"].dtype)

    out_pad = bilstm_dense(x_comb, len_col, kparams["wih_comb"], kparams["whh_comb"],
                           kparams["b_comb"], kparams["wd_pad"], kparams["bd_pad"],
                           b_pad)
    # Dropout(p=0.2) is identity in eval mode; slice off batch / output padding.
    return out_pad[:B, :kparams["num_output"]]


# ----------------------------------------------------------------------------
# Pure-JAX f32 reference (PyTorch math) for the correctness check.
# ----------------------------------------------------------------------------
def reference_forward(params, text_index, text_lengths):
    embedded = jnp.take(params["emb"], text_index, axis=0)
    x = jnp.transpose(embedded, (1, 0, 2)).astype(jnp.float32)        # (T, B, E)
    T, B, _ = x.shape
    H = params["whh"].shape[2]

    def run_dir(d):
        wih_t = params["wih"][d].T
        whh_t = params["whh"][d].T
        b = (params["b_ih"][d] + params["b_hh"][d])[None, :]
        h = jnp.zeros((B, H), jnp.float32)
        c = jnp.zeros((B, H), jnp.float32)
        order = range(T) if d == 0 else range(T - 1, -1, -1)
        for t in order:
            gates = x[t] @ wih_t + h @ whh_t + b
            i_g = jax.nn.sigmoid(gates[:, 0 * H:1 * H])
            f_g = jax.nn.sigmoid(gates[:, 1 * H:2 * H])
            g_g = jnp.tanh(gates[:, 2 * H:3 * H])
            o_g = jax.nn.sigmoid(gates[:, 3 * H:4 * H])
            c_new = f_g * c + i_g * g_g
            h_new = o_g * jnp.tanh(c_new)
            m = (text_lengths > t)[:, None]
            c = jnp.where(m, c_new, c)
            h = jnp.where(m, h_new, h)
        return h

    h_f, h_b = run_dir(0), run_dir(1)
    hidden = jnp.concatenate([h_f, h_b], axis=1)
    return hidden @ params["dense_w"].T + params["dense_b"]


# ----------------------------------------------------------------------------
# Deterministic parameter init (shapes match nn.Embedding / nn.LSTM / nn.Linear)
# ----------------------------------------------------------------------------
def init_params(key, vocab_size, embedding_dim, hidden_size, num_output):
    ks = jax.random.split(key, 7)
    E, H, N = embedding_dim, hidden_size, num_output

    emb = jax.random.normal(ks[0], (vocab_size, E), jnp.float32) * 0.1
    emb = emb.at[0].set(0.0)                       # padding_idx=0

    scale = 1.0 / jnp.sqrt(jnp.float32(H))
    wih = jax.random.uniform(ks[1], (2, 4 * H, E), jnp.float32, -scale, scale)
    whh = jax.random.uniform(ks[2], (2, 4 * H, H), jnp.float32, -scale, scale)
    b_ih = jax.random.uniform(ks[3], (2, 4 * H), jnp.float32, -scale, scale)
    b_hh = jax.random.uniform(ks[4], (2, 4 * H), jnp.float32, -scale, scale)

    dense_w = jax.random.uniform(ks[5], (N, 2 * H), jnp.float32, -0.1, 0.1)
    dense_b = jax.random.uniform(ks[6], (N,), jnp.float32, -0.1, 0.1)

    return {"emb": emb, "wih": wih, "whh": whh, "b_ih": b_ih, "b_hh": b_hh,
            "dense_w": dense_w, "dense_b": dense_b}


if __name__ == "__main__":
    VOCAB, E, H, N_OUT = 50, 32, 32, 8
    B, T = 4, 8

    key = jax.random.PRNGKey(0)
    kp, kx = jax.random.split(key)
    params = init_params(kp, VOCAB, E, H, N_OUT)
    kparams = prepare_kernel_params(params)

    text_lengths = jnp.array([8, 5, 7, 3], dtype=jnp.int32)           # (B,)
    tokens = jax.random.randint(kx, (B, T), 1, VOCAB, dtype=jnp.int32)
    pad_mask = jnp.arange(T)[None, :] < text_lengths[:, None]
    text_index = jnp.where(pad_mask, tokens, 0)                       # (B, T), 0 = pad

    fwd = jax.jit(functools.partial(lstm_model_forward, kparams))
    out = fwd(text_index, text_lengths)
    jax.block_until_ready(out)

    ref = reference_forward(params, text_index, text_lengths)
    assert out.shape == (B, N_OUT)
    # bf16 MXU operands (f32 accumulation / state / nonlinearities) -> loosened tolerance.
    assert jnp.allclose(out, ref, rtol=2e-2, atol=2e-2), "mismatch vs reference"

    print("KERNEL_OK")
</pallas_src>

<mosaic_0001>
module attributes {stable_mosaic.version = 11 : i64} {
  func.func @_bilstm_dense_kernel(%arg0: memref<64x64xbf16, #tpu.memory_space<vmem>>, %arg1: memref<8x1xi32, #tpu.memory_space<vmem>>, %arg2: memref<64x256xbf16, #tpu.memory_space<vmem>>, %arg3: memref<64x256xbf16, #tpu.memory_space<vmem>>, %arg4: memref<1x256xf32, #tpu.memory_space<vmem>>, %arg5: memref<64x128xbf16, #tpu.memory_space<vmem>>, %arg6: memref<1x128xf32, #tpu.memory_space<vmem>>, %arg7: memref<8x128xf32, #tpu.memory_space<vmem>>) attributes {dimension_semantics = [], scalar_prefetch = 0 : i64, scratch_operands = 0 : i64, tpu.core_type = #tpu.core_type<tc>} {
    %c0 = arith.constant 0 : index
    %c0_0 = arith.constant 0 : index
    %0 = vector.load %arg0[%c0, %c0_0] : memref<64x64xbf16, #tpu.memory_space<vmem>>, vector<64x64xbf16>
    %c0_1 = arith.constant 0 : index
    %c0_2 = arith.constant 0 : index
    %1 = vector.load %arg2[%c0_1, %c0_2] : memref<64x256xbf16, #tpu.memory_space<vmem>>, vector<64x256xbf16>
    %cst = arith.constant dense<0.000000e+00> : vector<64x256xf32>
    %2 = tpu.matmul %0, %1, %cst {dimension_numbers = #tpu.dot_dimension_numbers<[1], [0], [0], [1], [0, 0, 1, 1], [], []>} : vector<64x64xbf16>, vector<64x256xbf16>, vector<64x256xf32> -> vector<64x256xf32>
    %c0_3 = arith.constant 0 : index
    %c0_4 = arith.constant 0 : index
    %3 = vector.load %arg4[%c0_3, %c0_4] : memref<1x256xf32, #tpu.memory_space<vmem>>, vector<1x256xf32>
    %4 = vector.broadcast %3 : vector<1x256xf32> to vector<64x256xf32>
    %5 = arith.addf %2, %4 : vector<64x256xf32>
    %6 = tpu.iota {dimensions = array<i32: 0>} : vector<8x64xi32>
    %7 = tpu.iota {dimensions = array<i32: 1>} : vector<8x64xi32>
    %c32_i32 = arith.constant 32 : i32
    %8 = vector.broadcast %c32_i32 : i32 to vector<8x64xi32>
    %9 = arith.cmpi slt, %7, %8 : vector<8x64xi32>
    %c7_i32 = arith.constant 7 : i32
    %10 = vector.broadcast %c7_i32 : i32 to vector<8x64xi32>
    %11 = arith.subi %10, %6 : vector<8x64xi32>
    %12 = arith.select %9, %6, %11 : vector<8x64xi1>, vector<8x64xi32>
    %13 = vector.shape_cast %12 : vector<8x64xi32> to vector<8x1x64xi32>
    %c0_5 = arith.constant 0 : index
    %c0_6 = arith.constant 0 : index
    %14 = vector.load %arg1[%c0_5, %c0_6] : memref<8x1xi32, #tpu.memory_space<vmem>>, vector<8x1xi32>
    %15 = vector.shape_cast %14 : vector<8x1xi32> to vector<1x8x1xi32>
    %16 = vector.broadcast %13 : vector<8x1x64xi32> to vector<8x8x64xi32>
    %17 = vector.broadcast %15 : vector<1x8x1xi32> to vector<8x8x64xi32>
    %18 = arith.cmpi slt, %16, %17 : vector<8x8x64xi32>
    %c0_7 = arith.constant 0 : index
    %c0_8 = arith.constant 0 : index
    %19 = vector.load %arg3[%c0_7, %c0_8] : memref<64x256xbf16, #tpu.memory_space<vmem>>, vector<64x256xbf16>
    %cst_9 = arith.constant 0.000000e+00 : f32
    %20 = vector.broadcast %cst_9 : f32 to vector<8x64xf32>
    %cst_10 = arith.constant 0.000000e+00 : f32
    %21 = vector.broadcast %cst_10 : f32 to vector<8x64xf32>
    %22 = vector.extract_strided_slice %5 {offsets = [0, 0], sizes = [8, 256], strides = [1, 1]} : vector<64x256xf32> to vector<8x256xf32>
    %23 = arith.truncf %20 : vector<8x64xf32> to vector<8x64xbf16>
    %cst_11 = arith.constant dense<0.000000e+00> : vector<8x256xf32>
    %24 = tpu.matmul %23, %19, %cst_11 {dimension_numbers = #tpu.dot_dimension_numbers<[1], [0], [0], [1], [0, 0, 1, 1], [], []>} : vector<8x64xbf16>, vector<64x256xbf16>, vector<8x256xf32> -> vector<8x256xf32>
    %25 = arith.addf %22, %24 : vector<8x256xf32>
    %26 = vector.extract_strided_slice %25 {offsets = [0, 0], sizes = [8, 64], strides = [1, 1]} : vector<8x256xf32> to vector<8x64xf32>
    %27 = arith.negf %26 : vector<8x64xf32>
    %28 = math.exp %27 : vector<8x64xf32>
    %cst_12 = arith.constant 1.000000e+00 : f32
    %29 = vector.broadcast %cst_12 : f32 to vector<8x64xf32>
    %30 = arith.addf %29, %28 : vector<8x64xf32>
    %31 = arith.divf %29, %30 : vector<8x64xf32>
    %32 = vector.extract_strided_slice %25 {offsets = [0, 64], sizes = [8, 64], strides = [1, 1]} : vector<8x256xf32> to vector<8x64xf32>
    %33 = arith.negf %32 : vector<8x64xf32>
    %34 = math.exp %33 : vector<8x64xf32>
    %cst_13 = arith.constant 1.000000e+00 : f32
    %35 = vector.broadcast %cst_13 : f32 to vector<8x64xf32>
    %36 = arith.addf %35, %34 : vector<8x64xf32>
    %37 = arith.divf %35, %36 : vector<8x64xf32>
    %38 = vector.extract_strided_slice %25 {offsets = [0, 128], sizes = [8, 64], strides = [1, 1]} : vector<8x256xf32> to vector<8x64xf32>
    %39 = math.tanh %38 : vector<8x64xf32>
    %40 = vector.extract_strided_slice %25 {offsets = [0, 192], sizes = [8, 64], strides = [1, 1]} : vector<8x256xf32> to vector<8x64xf32>
    %41 = arith.negf %40 : vector<8x64xf32>
    %42 = math.exp %41 : vector<8x64xf32>
    %cst_14 = arith.constant 1.000000e+00 : f32
    %43 = vector.broadcast %cst_14 : f32 to vector<8x64xf32>
    %44 = arith.addf %43, %42 : vector<8x64xf32>
    %45 = arith.divf %43, %44 : vector<8x64xf32>
    %46 = arith.mulf %37, %21 : vector<8x64xf32>
    %47 = arith.mulf %31, %39 : vector<8x64xf32>
    %48 = arith.addf %46, %47 : vector<8x64xf32>
    %49 = math.tanh %48 : vector<8x64xf32>
    %50 = arith.mulf %45, %49 : vector<8x64xf32>
    %51 = vector.extract_strided_slice %18 {offsets = [0, 0, 0], sizes = [1, 8, 64], strides = [1, 1, 1]} : vector<8x8x64xi1> to vector<1x8x64xi1>
    %52 = vector.shape_cast %51 : vector<1x8x64xi1> to vector<8x64xi1>
    %53 = arith.select %52, %48, %21 : vector<8x64xi1>, vector<8x64xf32>
    %54 = arith.select %52, %50, %20 : vector<8x64xi1>, vector<8x64xf32>
    %55 = vector.extract_strided_slice %5 {offsets = [8, 0], sizes = [8, 256], strides = [1, 1]} : vector<64x256xf32> to vector<8x256xf32>
    %56 = arith.truncf %54 : vector<8x64xf32> to vector<8x64xbf16>
    %cst_15 = arith.constant dense<0.000000e+00> : vector<8x256xf32>
    %57 = tpu.matmul %56, %19, %cst_15 {dimension_numbers = #tpu.dot_dimension_numbers<[1], [0], [0], [1], [0, 0, 1, 1], [], []>} : vector<8x64xbf16>, vector<64x256xbf16>, vector<8x256xf32> -> vector<8x256xf32>
    %58 = arith.addf %55, %57 : vector<8x256xf32>
    %59 = vector.extract_strided_slice %58 {offsets = [0, 0], sizes = [8, 64], strides = [1, 1]} : vector<8x256xf32> to vector<8x64xf32>
    %60 = arith.negf %59 : vector<8x64xf32>
    %61 = math.exp %60 : vector<8x64xf32>
    %cst_16 = arith.constant 1.000000e+00 : f32
    %62 = vector.broadcast %cst_16 : f32 to vector<8x64xf32>
    %63 = arith.addf %62, %61 : vector<8x64xf32>
    %64 = arith.divf %62, %63 : vector<8x64xf32>
    %65 = vector.extract_strided_slice %58 {offsets = [0, 64], sizes = [8, 64], strides = [1, 1]} : vector<8x256xf32> to vector<8x64xf32>
    %66 = arith.negf %65 : vector<8x64xf32>
    %67 = math.exp %66 : vector<8x64xf32>
    %cst_17 = arith.constant 1.000000e+00 : f32
    %68 = vector.broadcast %cst_17 : f32 to vector<8x64xf32>
    %69 = arith.addf %68, %67 : vector<8x64xf32>
    %70 = arith.divf %68, %69 : vector<8x64xf32>
    %71 = vector.extract_strided_slice %58 {offsets = [0, 128], sizes = [8, 64], strides = [1, 1]} : vector<8x256xf32> to vector<8x64xf32>
    %72 = math.tanh %71 : vector<8x64xf32>
    %73 = vector.extract_strided_slice %58 {offsets = [0, 192], sizes = [8, 64], strides = [1, 1]} : vector<8x256xf32> to vector<8x64xf32>
    %74 = arith.negf %73 : vector<8x64xf32>
    %75 = math.exp %74 : vector<8x64xf32>
    %cst_18 = arith.constant 1.000000e+00 : f32
    %76 = vector.broadcast %cst_18 : f32 to vector<8x64xf32>
    %77 = arith.addf %76, %75 : vector<8x64xf32>
    %78 = arith.divf %76, %77 : vector<8x64xf32>
    %79 = arith.mulf %70, %53 : vector<8x64xf32>
    %80 = arith.mulf %64, %72 : vector<8x64xf32>
    %81 = arith.addf %79, %80 : vector<8x64xf32>
    %82 = math.tanh %81 : vector<8x64xf32>
    %83 = arith.mulf %78, %82 : vector<8x64xf32>
    %84 = vector.extract_strided_slice %18 {offsets = [1, 0, 0], sizes = [1, 8, 64], strides = [1, 1, 1]} : vector<8x8x64xi1> to vector<1x8x64xi1>
    %85 = vector.shape_cast %84 : vector<1x8x64xi1> to vector<8x64xi1>
    %86 = arith.select %85, %81, %53 : vector<8x64xi1>, vector<8x64xf32>
    %87 = arith.select %85, %83, %54 : vector<8x64xi1>, vector<8x64xf32>
    %88 = vector.extract_strided_slice %5 {offsets = [16, 0], sizes = [8, 256], strides = [1, 1]} : vector<64x256xf32> to vector<8x256xf32>
    %89 = arith.truncf %87 : vector<8x64xf32> to vector<8x64xbf16>
    %cst_19 = arith.constant dense<0.000000e+00> : vector<8x256xf32>
    %90 = tpu.matmul %89, %19, %cst_19 {dimension_numbers = #tpu.dot_dimension_numbers<[1], [0], [0], [1], [0, 0, 1, 1], [], []>} : vector<8x64xbf16>, vector<64x256xbf16>, vector<8x256xf32> -> vector<8x256xf32>
    %91 = arith.addf %88, %90 : vector<8x256xf32>
    %92 = vector.extract_strided_slice %91 {offsets = [0, 0], sizes = [8, 64], strides = [1, 1]} : vector<8x256xf32> to vector<8x64xf32>
    %93 = arith.negf %92 : vector<8x64xf32>
    %94 = math.exp %93 : vector<8x64xf32>
    %cst_20 = arith.constant 1.000000e+00 : f32
    %95 = vector.broadcast %cst_20 : f32 to vector<8x64xf32>
    %96 = arith.addf %95, %94 : vector<8x64xf32>
    %97 = arith.divf %95, %96 : vector<8x64xf32>
    %98 = vector.extract_strided_slice %91 {offsets = [0, 64], sizes = [8, 64], strides = [1, 1]} : vector<8x256xf32> to vector<8x64xf32>
    %99 = arith.negf %98 : vector<8x64xf32>
    %100 = math.exp %99 : vector<8x64xf32>
    %cst_21 = arith.constant 1.000000e+00 : f32
    %101 = vector.broadcast %cst_21 : f32 to vector<8x64xf32>
    %102 = arith.addf %101, %100 : vector<8x64xf32>
    %103 = arith.divf %101, %102 : vector<8x64xf32>
    %104 = vector.extract_strided_slice %91 {offsets = [0, 128], sizes = [8, 64], strides = [1, 1]} : vector<8x256xf32> to vector<8x64xf32>
    %105 = math.tanh %104 : vector<8x64xf32>
    %106 = vector.extract_strided_slice %91 {offsets = [0, 192], sizes = [8, 64], strides = [1, 1]} : vector<8x256xf32> to vector<8x64xf32>
    %107 = arith.negf %106 : vector<8x64xf32>
    %108 = math.exp %107 : vector<8x64xf32>
    %cst_22 = arith.constant 1.000000e+00 : f32
    %109 = vector.broadcast %cst_22 : f32 to vector<8x64xf32>
    %110 = arith.addf %109, %108 : vector<8x64xf32>
    %111 = arith.divf %109, %110 : vector<8x64xf32>
    %112 = arith.mulf %103, %86 : vector<8x64xf32>
    %113 = arith.mulf %97, %105 : vector<8x64xf32>
    %114 = arith.addf %112, %113 : vector<8x64xf32>
    %115 = math.tanh %114 : vector<8x64xf32>
    %116 = arith.mulf %111, %115 : vector<8x64xf32>
    %117 = vector.extract_strided_slice %18 {offsets = [2, 0, 0], sizes = [1, 8, 64], strides = [1, 1, 1]} : vector<8x8x64xi1> to vector<1x8x64xi1>
    %118 = vector.shape_cast %117 : vector<1x8x64xi1> to vector<8x64xi1>
    %119 = arith.select %118, %114, %86 : vector<8x64xi1>, vector<8x64xf32>
    %120 = arith.select %118, %116, %87 : vector<8x64xi1>, vector<8x64xf32>
    %121 = vector.extract_strided_slice %5 {offsets = [24, 0], sizes = [8, 256], strides = [1, 1]} : vector<64x256xf32> to vector<8x256xf32>
    %122 = arith.truncf %120 : vector<8x64xf32> to vector<8x64xbf16>
    %cst_23 = arith.constant dense<0.000000e+00> : vector<8x256xf32>
    %123 = tpu.matmul %122, %19, %cst_23 {dimension_numbers = #tpu.dot_dimension_numbers<[1], [0], [0], [1], [0, 0, 1, 1], [], []>} : vector<8x64xbf16>, vector<64x256xbf16>, vector<8x256xf32> -> vector<8x256xf32>
    %124 = arith.addf %121, %123 : vector<8x256xf32>
    %125 = vector.extract_strided_slice %124 {offsets = [0, 0], sizes = [8, 64], strides = [1, 1]} : vector<8x256xf32> to vector<8x64xf32>
    %126 = arith.negf %125 : vector<8x64xf32>
    %127 = math.exp %126 : vector<8x64xf32>
    %cst_24 = arith.constant 1.000000e+00 : f32
    %128 = vector.broadcast %cst_24 : f32 to vector<8x64xf32>
    %129 = arith.addf %128, %127 : vector<8x64xf32>
    %130 = arith.divf %128, %129 : vector<8x64xf32>
    %131 = vector.extract_strided_slice %124 {offsets = [0, 64], sizes = [8, 64], strides = [1, 1]} : vector<8x256xf32> to vector<8x64xf32>
    %132 = arith.negf %131 : vector<8x64xf32>
    %133 = math.exp %132 : vector<8x64xf32>
    %cst_25 = arith.constant 1.000000e+00 : f32
    %134 = vector.broadcast %cst_25 : f32 to vector<8x64xf32>
    %135 = arith.addf %134, %133 : vector<8x64xf32>
    %136 = arith.divf %134, %135 : vector<8x64xf32>
    %137 = vector.extract_strided_slice %124 {offsets = [0, 128], sizes = [8, 64], strides = [1, 1]} : vector<8x256xf32> to vector<8x64xf32>
    %138 = math.tanh %137 : vector<8x64xf32>
    %139 = vector.extract_strided_slice %124 {offsets = [0, 192], sizes = [8, 64], strides = [1, 1]} : vector<8x256xf32> to vector<8x64xf32>
    %140 = arith.negf %139 : vector<8x64xf32>
    %141 = math.exp %140 : vector<8x64xf32>
    %cst_26 = arith.constant 1.000000e+00 : f32
    %142 = vector.broadcast %cst_26 : f32 to vector<8x64xf32>
    %143 = arith.addf %142, %141 : vector<8x64xf32>
    %144 = arith.divf %142, %143 : vector<8x64xf32>
    %145 = arith.mulf %136, %119 : vector<8x64xf32>
    %146 = arith.mulf %130, %138 : vector<8x64xf32>
    %147 = arith.addf %145, %146 : vector<8x64xf32>
    %148 = math.tanh %147 : vector<8x64xf32>
    %149 = arith.mulf %144, %148 : vector<8x64xf32>
    %150 = vector.extract_strided_slice %18 {offsets = [3, 0, 0], sizes = [1, 8, 64], strides = [1, 1, 1]} : vector<8x8x64xi1> to vector<1x8x64xi1>
    %151 = vector.shape_cast %150 : vector<1x8x64xi1> to vector<8x64xi1>
    %152 = arith.select %151, %147, %119 : vector<8x64xi1>, vector<8x64xf32>
    %153 = arith.select %151, %149, %120 : vector<8x64xi1>, vector<8x64xf32>
    %154 = vector.extract_strided_slice %5 {offsets = [32, 0], sizes = [8, 256], strides = [1, 1]} : vector<64x256xf32> to vector<8x256xf32>
    %155 = arith.truncf %153 : vector<8x64xf32> to vector<8x64xbf16>
    %cst_27 = arith.constant dense<0.000000e+00> : vector<8x256xf32>
    %156 = tpu.matmul %155, %19, %cst_27 {dimension_numbers = #tpu.dot_dimension_numbers<[1], [0], [0], [1], [0, 0, 1, 1], [], []>} : vector<8x64xbf16>, vector<64x256xbf16>, vector<8x256xf32> -> vector<8x256xf32>
    %157 = arith.addf %154, %156 : vector<8x256xf32>
    %158 = vector.extract_strided_slice %157 {offsets = [0, 0], sizes = [8, 64], strides = [1, 1]} : vector<8x256xf32> to vector<8x64xf32>
    %159 = arith.negf %158 : vector<8x64xf32>
    %160 = math.exp %159 : vector<8x64xf32>
    %cst_28 = arith.constant 1.000000e+00 : f32
    %161 = vector.broadcast %cst_28 : f32 to vector<8x64xf32>
    %162 = arith.addf %161, %160 : vector<8x64xf32>
    %163 = arith.divf %161, %162 : vector<8x64xf32>
    %164 = vector.extract_strided_slice %157 {offsets = [0, 64], sizes = [8, 64], strides = [1, 1]} : vector<8x256xf32> to vector<8x64xf32>
    %165 = arith.negf %164 : vector<8x64xf32>
    %166 = math.exp %165 : vector<8x64xf32>
    %cst_29 = arith.constant 1.000000e+00 : f32
    %167 = vector.broadcast %cst_29 : f32 to vector<8x64xf32>
    %168 = arith.addf %167, %166 : vector<8x64xf32>
    %169 = arith.divf %167, %168 : vector<8x64xf32>
    %170 = vector.extract_strided_slice %157 {offsets = [0, 128], sizes = [8, 64], strides = [1, 1]} : vector<8x256xf32> to vector<8x64xf32>
    %171 = math.tanh %170 : vector<8x64xf32>
    %172 = vector.extract_strided_slice %157 {offsets = [0, 192], sizes = [8, 64], strides = [1, 1]} : vector<8x256xf32> to vector<8x64xf32>
    %173 = arith.negf %172 : vector<8x64xf32>
    %174 = math.exp %173 : vector<8x64xf32>
    %cst_30 = arith.constant 1.000000e+00 : f32
    %175 = vector.broadcast %cst_30 : f32 to vector<8x64xf32>
    %176 = arith.addf %175, %174 : vector<8x64xf32>
    %177 = arith.divf %175, %176 : vector<8x64xf32>
    %178 = arith.mulf %169, %152 : vector<8x64xf32>
    %179 = arith.mulf %163, %171 : vector<8x64xf32>
    %180 = arith.addf %178, %179 : vector<8x64xf32>
    %181 = math.tanh %180 : vector<8x64xf32>
    %182 = arith.mulf %177, %181 : vector<8x64xf32>
    %183 = vector.extract_strided_slice %18 {offsets = [4, 0, 0], sizes = [1, 8, 64], strides = [1, 1, 1]} : vector<8x8x64xi1> to vector<1x8x64xi1>
    %184 = vector.shape_cast %183 : vector<1x8x64xi1> to vector<8x64xi1>
    %185 = arith.select %184, %180, %152 : vector<8x64xi1>, vector<8x64xf32>
    %186 = arith.select %184, %182, %153 : vector<8x64xi1>, vector<8x64xf32>
    %187 = vector.extract_strided_slice %5 {offsets = [40, 0], sizes = [8, 256], strides = [1, 1]} : vector<64x256xf32> to vector<8x256xf32>
    %188 = arith.truncf %186 : vector<8x64xf32> to vector<8x64xbf16>
    %cst_31 = arith.constant dense<0.000000e+00> : vector<8x256xf32>
    %189 = tpu.matmul %188, %19, %cst_31 {dimension_numbers = #tpu.dot_dimension_numbers<[1], [0], [0], [1], [0, 0, 1, 1], [], []>} : vector<8x64xbf16>, vector<64x256xbf16>, vector<8x256xf32> -> vector<8x256xf32>
    %190 = arith.addf %187, %189 : vector<8x256xf32>
    %191 = vector.extract_strided_slice %190 {offsets = [0, 0], sizes = [8, 64], strides = [1, 1]} : vector<8x256xf32> to vector<8x64xf32>
    %192 = arith.negf %191 : vector<8x64xf32>
    %193 = math.exp %192 : vector<8x64xf32>
    %cst_32 = arith.constant 1.000000e+00 : f32
    %194 = vector.broadcast %cst_32 : f32 to vector<8x64xf32>
    %195 = arith.addf %194, %193 : vector<8x64xf32>
    %196 = arith.divf %194, %195 : vector<8x64xf32>
    %197 = vector.extract_strided_slice %190 {offsets = [0, 64], sizes = [8, 64], strides = [1, 1]} : vector<8x256xf32> to vector<8x64xf32>
    %198 = arith.negf %197 : vector<8x64xf32>
    %199 = math.exp %198 : vector<8x64xf32>
    %cst_33 = arith.constant 1.000000e+00 : f32
    %200 = vector.broadcast %cst_33 : f32 to vector<8x64xf32>
    %201 = arith.addf %200, %199 : vector<8x64xf32>
    %202 = arith.divf %200, %201 : vector<8x64xf32>
    %203 = vector.extract_strided_slice %190 {offsets = [0, 128], sizes = [8, 64], strides = [1, 1]} : vector<8x256xf32> to vector<8x64xf32>
    %204 = math.tanh %203 : vector<8x64xf32>
    %205 = vector.extract_strided_slice %190 {offsets = [0, 192], sizes = [8, 64], strides = [1, 1]} : vector<8x256xf32> to vector<8x64xf32>
    %206 = arith.negf %205 : vector<8x64xf32>
    %207 = math.exp %206 : vector<8x64xf32>
    %cst_34 = arith.constant 1.000000e+00 : f32
    %208 = vector.broadcast %cst_34 : f32 to vector<8x64xf32>
    %209 = arith.addf %208, %207 : vector<8x64xf32>
    %210 = arith.divf %208, %209 : vector<8x64xf32>
    %211 = arith.mulf %202, %185 : vector<8x64xf32>
    %212 = arith.mulf %196, %204 : vector<8x64xf32>
    %213 = arith.addf %211, %212 : vector<8x64xf32>
    %214 = math.tanh %213 : vector<8x64xf32>
    %215 = arith.mulf %210, %214 : vector<8x64xf32>
    %216 = vector.extract_strided_slice %18 {offsets = [5, 0, 0], sizes = [1, 8, 64], strides = [1, 1, 1]} : vector<8x8x64xi1> to vector<1x8x64xi1>
    %217 = vector.shape_cast %216 : vector<1x8x64xi1> to vector<8x64xi1>
    %218 = arith.select %217, %213, %185 : vector<8x64xi1>, vector<8x64xf32>
    %219 = arith.select %217, %215, %186 : vector<8x64xi1>, vector<8x64xf32>
    %220 = vector.extract_strided_slice %5 {offsets = [48, 0], sizes = [8, 256], strides = [1, 1]} : vector<64x256xf32> to vector<8x256xf32>
    %221 = arith.truncf %219 : vector<8x64xf32> to vector<8x64xbf16>
    %cst_35 = arith.constant dense<0.000000e+00> : vector<8x256xf32>
    %222 = tpu.matmul %221, %19, %cst_35 {dimension_numbers = #tpu.dot_dimension_numbers<[1], [0], [0], [1], [0, 0, 1, 1], [], []>} : vector<8x64xbf16>, vector<64x256xbf16>, vector<8x256xf32> -> vector<8x256xf32>
    %223 = arith.addf %220, %222 : vector<8x256xf32>
    %224 = vector.extract_strided_slice %223 {offsets = [0, 0], sizes = [8, 64], strides = [1, 1]} : vector<8x256xf32> to vector<8x64xf32>
    %225 = arith.negf %224 : vector<8x64xf32>
    %226 = math.exp %225 : vector<8x64xf32>
    %cst_36 = arith.constant 1.000000e+00 : f32
    %227 = vector.broadcast %cst_36 : f32 to vector<8x64xf32>
    %228 = arith.addf %227, %226 : vector<8x64xf32>
    %229 = arith.divf %227, %228 : vector<8x64xf32>
    %230 = vector.extract_strided_slice %223 {offsets = [0, 64], sizes = [8, 64], strides = [1, 1]} : vector<8x256xf32> to vector<8x64xf32>
    %231 = arith.negf %230 : vector<8x64xf32>
    %232 = math.exp %231 : vector<8x64xf32>
    %cst_37 = arith.constant 1.000000e+00 : f32
    %233 = vector.broadcast %cst_37 : f32 to vector<8x64xf32>
    %234 = arith.addf %233, %232 : vector<8x64xf32>
    %235 = arith.divf %233, %234 : vector<8x64xf32>
    %236 = vector.extract_strided_slice %223 {offsets = [0, 128], sizes = [8, 64], strides = [1, 1]} : vector<8x256xf32> to vector<8x64xf32>
    %237 = math.tanh %236 : vector<8x64xf32>
    %238 = vector.extract_strided_slice %223 {offsets = [0, 192], sizes = [8, 64], strides = [1, 1]} : vector<8x256xf32> to vector<8x64xf32>
    %239 = arith.negf %238 : vector<8x64xf32>
    %240 = math.exp %239 : vector<8x64xf32>
    %cst_38 = arith.constant 1.000000e+00 : f32
    %241 = vector.broadcast %cst_38 : f32 to vector<8x64xf32>
    %242 = arith.addf %241, %240 : vector<8x64xf32>
    %243 = arith.divf %241, %242 : vector<8x64xf32>
    %244 = arith.mulf %235, %218 : vector<8x64xf32>
    %245 = arith.mulf %229, %237 : vector<8x64xf32>
    %246 = arith.addf %244, %245 : vector<8x64xf32>
    %247 = math.tanh %246 : vector<8x64xf32>
    %248 = arith.mulf %243, %247 : vector<8x64xf32>
    %249 = vector.extract_strided_slice %18 {offsets = [6, 0, 0], sizes = [1, 8, 64], strides = [1, 1, 1]} : vector<8x8x64xi1> to vector<1x8x64xi1>
    %250 = vector.shape_cast %249 : vector<1x8x64xi1> to vector<8x64xi1>
    %251 = arith.select %250, %246, %218 : vector<8x64xi1>, vector<8x64xf32>
    %252 = arith.select %250, %248, %219 : vector<8x64xi1>, vector<8x64xf32>
    %253 = vector.extract_strided_slice %5 {offsets = [56, 0], sizes = [8, 256], strides = [1, 1]} : vector<64x256xf32> to vector<8x256xf32>
    %254 = arith.truncf %252 : vector<8x64xf32> to vector<8x64xbf16>
    %cst_39 = arith.constant dense<0.000000e+00> : vector<8x256xf32>
    %255 = tpu.matmul %254, %19, %cst_39 {dimension_numbers = #tpu.dot_dimension_numbers<[1], [0], [0], [1], [0, 0, 1, 1], [], []>} : vector<8x64xbf16>, vector<64x256xbf16>, vector<8x256xf32> -> vector<8x256xf32>
    %256 = arith.addf %253, %255 : vector<8x256xf32>
    %257 = vector.extract_strided_slice %256 {offsets = [0, 0], sizes = [8, 64], strides = [1, 1]} : vector<8x256xf32> to vector<8x64xf32>
    %258 = arith.negf %257 : vector<8x64xf32>
    %259 = math.exp %258 : vector<8x64xf32>
    %cst_40 = arith.constant 1.000000e+00 : f32
    %260 = vector.broadcast %cst_40 : f32 to vector<8x64xf32>
    %261 = arith.addf %260, %259 : vector<8x64xf32>
    %262 = arith.divf %260, %261 : vector<8x64xf32>
    %263 = vector.extract_strided_slice %256 {offsets = [0, 64], sizes = [8, 64], strides = [1, 1]} : vector<8x256xf32> to vector<8x64xf32>
    %264 = arith.negf %263 : vector<8x64xf32>
    %265 = math.exp %264 : vector<8x64xf32>
    %cst_41 = arith.constant 1.000000e+00 : f32
    %266 = vector.broadcast %cst_41 : f32 to vector<8x64xf32>
    %267 = arith.addf %266, %265 : vector<8x64xf32>
    %268 = arith.divf %266, %267 : vector<8x64xf32>
    %269 = vector.extract_strided_slice %256 {offsets = [0, 128], sizes = [8, 64], strides = [1, 1]} : vector<8x256xf32> to vector<8x64xf32>
    %270 = math.tanh %269 : vector<8x64xf32>
    %271 = vector.extract_strided_slice %256 {offsets = [0, 192], sizes = [8, 64], strides = [1, 1]} : vector<8x256xf32> to vector<8x64xf32>
    %272 = arith.negf %271 : vector<8x64xf32>
    %273 = math.exp %272 : vector<8x64xf32>
    %cst_42 = arith.constant 1.000000e+00 : f32
    %274 = vector.broadcast %cst_42 : f32 to vector<8x64xf32>
    %275 = arith.addf %274, %273 : vector<8x64xf32>
    %276 = arith.divf %274, %275 : vector<8x64xf32>
    %277 = arith.mulf %268, %251 : vector<8x64xf32>
    %278 = arith.mulf %262, %270 : vector<8x64xf32>
    %279 = arith.addf %277, %278 : vector<8x64xf32>
    %280 = math.tanh %279 : vector<8x64xf32>
    %281 = arith.mulf %276, %280 : vector<8x64xf32>
    %282 = vector.extract_strided_slice %18 {offsets = [7, 0, 0], sizes = [1, 8, 64], strides = [1, 1, 1]} : vector<8x8x64xi1> to vector<1x8x64xi1>
    %283 = vector.shape_cast %282 : vector<1x8x64xi1> to vector<8x64xi1>
    %284 = arith.select %283, %281, %252 : vector<8x64xi1>, vector<8x64xf32>
    %285 = arith.truncf %284 : vector<8x64xf32> to vector<8x64xbf16>
    %c0_43 = arith.constant 0 : index
    %c0_44 = arith.constant 0 : index
    %286 = vector.load %arg5[%c0_43, %c0_44] : memref<64x128xbf16, #tpu.memory_space<vmem>>, vector<64x128xbf16>
    %cst_45 = arith.constant dense<0.000000e+00> : vector<8x128xf32>
    %287 = tpu.matmul %285, %286, %cst_45 {dimension_numbers = #tpu.dot_dimension_numbers<[1], [0], [0], [1], [0, 0, 1, 1], [], []>} : vector<8x64xbf16>, vector<64x128xbf16>, vector<8x128xf32> -> vector<8x128xf32>
    %c0_46 = arith.constant 0 : index
    %c0_47 = arith.constant 0 : index
    %288 = vector.load %arg6[%c0_46, %c0_47] : memref<1x128xf32, #tpu.memory_space<vmem>>, vector<1x128xf32>
    %289 = vector.broadcast %288 : vector<1x128xf32> to vector<8x128xf32>
    %290 = arith.addf %287, %289 : vector<8x128xf32>
    %c0_48 = arith.constant 0 : index
    %c0_49 = arith.constant 0 : index
    %291 = vector.load %arg7[%c0_48, %c0_49] : memref<8x128xf32, #tpu.memory_space<vmem>>, vector<8x128xf32>
    tpu.vector_store %arg7[%c0_48, %c0_49], %290 {strides = array<i32>} : memref<8x128xf32, #tpu.memory_space<vmem>>, vector<8x128xf32>,
    return
  }
}

</mosaic_0001>

<bundles_post_ra>
// kernel: lstm_model_forward.1
= control target key start
LH: loop header
LB: loop body
LE: loop exit
PB: predicated region body
PF: predicated region fallthrough
CT: control target
= control target key end

     0   :  { %v1321_v3 = vmov 0   ;;  %vm109_vm0 = vcmask 523264   ;;  %s1748_s2 = inlined_call_operand.vmem [shape: bf16[64,256], index: 2, kind: input, shape index: {}]   ;;  %s1749_s3 = inlined_call_operand.vmem [shape: bf16[64,256], index: 3, kind: input, shape index: {}]   ;;  %s1750_s0 = inlined_call_operand.vmem [shape: bf16[64,64], index: 0, kind: input, shape index: {}]   ;;  %s1751_s4 = inlined_call_operand.vmem [shape: f32[1,256], index: 4, kind: input, shape index: {}]   ;;  %s1752_s1 = inlined_call_operand.vmem [shape: s32[8,1], index: 1, kind: input, shape index: {}]   ;;  %s1753_s5 = inlined_call_operand.vmem [shape: bf16[64,128], index: 5, kind: input, shape index: {}]   ;;  %s1754_s6 = inlined_call_operand.vmem [shape: f32[1,128], index: 6, kind: input, shape index: {}]   ;;  %s1755_s7 = inlined_call_operand.vmem [shape: f32[8,128], index: 7, kind: output, shape index: {}]  }
   0x1   :  { %v1104_v0 = vld [vmem:[%s1748_s2 + $0x30] sm:$0xf]  ;;  %v1208_v1 = vld [vmem:[%s1748_s2 + $0x34] sm:$0xf0]  ;;  %1223 = vset.pattern.permute.xlu0 %v1321_v3  ;;  %v1096_v6 = vld [vmem:[%s1748_s2 + $0x20] sm:$0xf] }
   0x2   :  { %v1144_v2 = vld [vmem:[%s1749_s3 + $0x30] sm:$0xf]  ;;  %v1105_v4 = vor.u32 %v1208_v1, %v1104_v0  ;;  %v1216_v5 = vld [vmem:[%s1749_s3 + $0x34] sm:$0xf0]  ;;  %v1206_v7 = vld [vmem:[%s1748_s2 + $0x24] sm:$0xf0] }
   0x3   :  { %v1382_v8 = vor.u32 %v1216_v5, %v1144_v2  ;;  %v1136_v9 = vld [vmem:[%s1749_s3 + $0x20] sm:$0xf]  ;;  %v1214_v10 = vld [vmem:[%s1749_s3 + $0x24] sm:$0xf0]  ;;  %v1097_v11 = vor.u32 %v1206_v7, %v1096_v6  ;;  %v1088_v12 = vld [vmem:[%s1748_s2 + $0x10] sm:$0xf] }
   0x4   :  { %126 = vmatpush.bf16.msra.mxu0 %v1105_v4  ;;  %v1204_v13 = vld [vmem:[%s1748_s2 + $0x14] sm:$0xf0]  ;;  %v1397_v14 = vor.u32 %v1214_v10, %v1136_v9  ;;  %v1128_v15 = vld [vmem:[%s1749_s3 + $0x10] sm:$0xf]  ;;  %v1215_v16 = vld [vmem:[%s1749_s3 + $0x34] sm:$0xf] }
   0x5   :  { %269 = vmatpush.bf16.msra.mxu2 %v1382_v8  ;;  %v1146_v17 = vld [vmem:[%s1749_s3 + $0x38] sm:$0xf0]  ;;  %v1212_v18 = vld [vmem:[%s1749_s3 + $0x14] sm:$0xf0]  ;;  %v1207_v20 = vld [vmem:[%s1748_s2 + $0x34] sm:$0xf]  ;;  %v1089_v26 = vor.u32 %v1204_v13, %v1088_v12 }
   0x6   :  { %v1411_v19 = vor.u32 %v1215_v16, %v1146_v17  ;;  %v1106_v21 = vld [vmem:[%s1748_s2 + $0x38] sm:$0xf0]  ;;  %v1080_v22 = vld [vmem:[%s1748_s2] sm:$0xf]  ;;  %v1202_v23 = vld [vmem:[%s1748_s2 + $0x4] sm:$0xf0]  ;;  %v1439_v30 = vor.u32 %v1212_v18, %v1128_v15 }
   0x7   :  { %v1109_v24 = vor.u32 %v1207_v20, %v1106_v21  ;;  %v1213_v25 = vld [vmem:[%s1749_s3 + $0x24] sm:$0xf]  ;;  %v1120_v27 = vld [vmem:[%s1749_s3] sm:$0xf]  ;;  %v1138_v28 = vld [vmem:[%s1749_s3 + $0x28] sm:$0xf0]  ;;  %v1081_v39 = vor.u32 %v1202_v23, %v1080_v22 }
   0x8   :  { %127 = vmatpush.bf16.msra.mxu0 %v1097_v11  ;;  %282 = vmatpush.bf16.msra.mxu3 %v1411_v19  ;;  %v1205_v29 = vld [vmem:[%s1748_s2 + $0x24] sm:$0xf]  ;;  %v1441_v31 = vor.u32 %v1213_v25, %v1138_v28  ;;  %v1098_v32 = vld [vmem:[%s1748_s2 + $0x28] sm:$0xf0]  ;;  %v1211_v33 = vld [vmem:[%s1749_s3 + $0x14] sm:$0xf] }
   0x9   :  { %270 = vmatpush.bf16.msra.mxu2 %v1397_v14  ;;  %155 = vmatpush.bf16.msra.mxu1 %v1109_v24  ;;  %v1130_v34 = vld [vmem:[%s1749_s3 + $0x18] sm:$0xf0]  ;;  %v1210_v35 = vld [vmem:[%s1749_s3 + $0x4] sm:$0xf0]  ;;  %v1101_v36 = vor.u32 %v1205_v29, %v1098_v32  ;;  %v1203_v37 = vld [vmem:[%s1748_s2 + $0x14] sm:$0xf] }
   0xa   :  { %v1090_v38 = vld [vmem:[%s1748_s2 + $0x18] sm:$0xf0]  ;;  %v1462_v40 = vor.u32 %v1211_v33, %v1130_v34  ;;  %v1465_v41 = vor.u32 %v1210_v35, %v1120_v27  ;;  %v1209_v43 = vld [vmem:[%s1749_s3 + $0x4] sm:$0xf]  ;;  %v1122_v44 = vld [vmem:[%s1749_s3 + $0x8] sm:$0xf0] }
   0xb   :  { %v1093_v42 = vor.u32 %v1203_v37, %v1090_v38  ;;  %v1201_v45 = vld [vmem:[%s1748_s2 + $0x4] sm:$0xf]  ;;  %v1082_v46 = vld [vmem:[%s1748_s2 + $0x8] sm:$0xf0]  ;;  %v1483_v48 = vor.u32 %v1209_v43, %v1122_v44  ;;  %v43_v50 = vld [vmem:[%s1751_s4] sm:$0x3]  ;;  %v180_v38 = vlaneseq }
   0xc   :  { %128 = vmatpush.bf16.msra.mxu0 %v1089_v26  ;;  %283 = vmatpush.bf16.msra.mxu3 %v1441_v31  ;;  %v1197_v47 = vld [vmem:[%s1750_s0] sm:$0xff]  ;;  %v1085_v49 = vor.u32 %v1201_v45, %v1082_v46  ;;  %v1526_v51 = vperm.slane %v43_v50, 0  ;;  %v1529_v62 = vperm.slane %v43_v50, 1  ;;  %s1322_s4 = smov 64  }
   0xd   :  { %271 = vmatpush.bf16.msra.mxu2 %v1439_v30  ;;  %156 = vmatpush.bf16.msra.mxu1 %v1101_v36  ;;  %v194_v17 = vld [vmem:[%s1752_s1] sm:$0xff] }
  0x10   :  { %129 = vmatpush.bf16.msra.mxu0 %v1081_v39  ;;  %284 = vmatpush.bf16.msra.mxu3 %v1462_v40  ;;  %v181_v39 = vshrl.u32 %v180_v38, 7 }
  0x11   :  { %272 = vmatpush.bf16.msra.mxu2 %v1465_v41  ;;  %157 = vmatpush.bf16.msra.mxu1 %v1093_v42  ;;  %v183_v42 = vand.u32 127, %v180_v38 }
  0x12   :  { %v185_v43 = vsub.s32 7, %v181_v39 }
  0x13   :  { %1110 = vmatmul.msk.bf16.vlgmr.msra.gmra.mxu0 %vm109_vm0, %v1197_v47  ;;  %vm184_vm9 = vcmp.lt.s32.totalorder %v183_v42, 32  ;;  %v1198_v42 = vld [vmem:[%s1750_s0 + $0x8] sm:$0xff] }
  0x14   :  { %641 = vmatpush.bf16.msrb.mxu0 %v1382_v8  ;;  %273 = vmatmul.bf16.vlgmr.msra.gmra.mxu2 %v1321_v3  ;;  %v1538_v44 = vsel %vm184_vm9, %v181_v39, %v185_v43 }
  0x15   :  { %359 = vmatpush.bf16.msrb.mxu2 %v1382_v8  ;;  %285 = vmatpush.bf16.msra.mxu3 %v1483_v48  ;;  %v195_v45 = vperm.slane %v1538_v44, 0  ;;  %v187_v43 = vrot.slane %v1538_v44, 1 }
  0x16   :  { %158 = vmatpush.bf16.msra.mxu1 %v1085_v49 }
  0x18   :  { %642 = vmatpush.bf16.msrb.mxu0 %v1397_v14  ;;  %286 = vmatmul.bf16.vlgmr.msra.gmra.mxu3 %v1321_v3 }
  0x19   :  { %372 = vmatpush.bf16.msrb.mxu3 %v1411_v19  ;;  %360 = vmatpush.bf16.msrb.mxu2 %v1397_v14 }
  0x1a   :  { %654 = vmatpush.bf16.msrb.mxu1 %v1411_v19 }
  0x1b   :  { %1114 = vmatmul.msk.bf16.vlgmr.msra.gmra.mxu1 %vm109_vm0, %v1197_v47 }
  0x1c   :  { %643 = vmatpush.bf16.msrb.mxu0 %v1439_v30 }
  0x1d   :  { %373 = vmatpush.bf16.msrb.mxu3 %v1441_v31  ;;  %361 = vmatpush.bf16.msrb.mxu2 %v1439_v30 }
  0x1e   :  { %655 = vmatpush.bf16.msrb.mxu1 %v1441_v31 }
  0x20   :  { %644 = vmatpush.bf16.msrb.mxu0 %v1465_v41 }
  0x21   :  { %374 = vmatpush.bf16.msrb.mxu3 %v1462_v40  ;;  %362 = vmatpush.bf16.msrb.mxu2 %v1465_v41 }
  0x22   :  { %656 = vmatpush.bf16.msrb.mxu1 %v1462_v40 }
  0x23   :  { %1111 = vmatmul.msk.bf16.gmra.mxu0 %vm109_vm0, %v1198_v42 }
  0x24   :  { %829 = vmatpush.bf16.msra.mxu0 %v1382_v8 }
  0x25   :  { %453 = vmatpush.bf16.msra.mxu2 %v1382_v8  ;;  %375 = vmatpush.bf16.msrb.mxu3 %v1483_v48 }
  0x26   :  { %657 = vmatpush.bf16.msrb.mxu1 %v1483_v48 }
  0x28   :  { %830 = vmatpush.bf16.msra.mxu0 %v1397_v14 }
  0x29   :  { %466 = vmatpush.bf16.msra.mxu3 %v1411_v19  ;;  %454 = vmatpush.bf16.msra.mxu2 %v1397_v14 }
  0x2a   :  { %842 = vmatpush.bf16.msra.mxu1 %v1411_v19 }
  0x2b   :  { %1115 = vmatmul.msk.bf16.gmra.mxu1 %vm109_vm0, %v1198_v42  ;;  %v188_v42 = vrot.slane %v1538_v44, 2 }
  0x2c   :  { %831 = vmatpush.bf16.msra.mxu0 %v1439_v30 }
  0x2d   :  { %467 = vmatpush.bf16.msra.mxu3 %v1441_v31  ;;  %455 = vmatpush.bf16.msra.mxu2 %v1439_v30 }
  0x2e   :  { %843 = vmatpush.bf16.msra.mxu1 %v1441_v31 }
  0x30   :  { %832 = vmatpush.bf16.msra.mxu0 %v1465_v41 }
  0x31   :  { %468 = vmatpush.bf16.msra.mxu3 %v1462_v40  ;;  %456 = vmatpush.bf16.msra.mxu2 %v1465_v41 }
  0x32   :  { %844 = vmatpush.bf16.msra.mxu1 %v1462_v40 }
  0x35   :  { %469 = vmatpush.bf16.msra.mxu3 %v1483_v48 }
  0x36   :  { %845 = vmatpush.bf16.msra.mxu1 %v1483_v48 }
  0x90   :  { %v131_v52 = vpop.f32.mrf.mxu0 }
  0x91   :  { %v132_v53 = vadd.f32 %v131_v52, %v1526_v51 }
  0x97   :  { %v274_v54 = vpop.f32.mrf.mxu2 }
  0x98   :  { %v291_v55 = vadd.f32 %v274_v54, %v132_v53  ;;  %v160_v63 = vpop.f32.mrf.mxu1  ;;  %v133_v54 = vpop.f32.mrf.mxu0 }
  0x99   :  { %v161_v0 = vadd.f32 %v160_v63, %v1529_v62 }
  0x9a   :  { %v1150_v56 = vmul.f32 -1.442695, %v291_v55  ;;  %v134_v55 = vadd.f32 %v133_v54, %v1526_v51 }
  0x9b   :  { %v287_v57 = vpop.f32.mrf.mxu3 }
  0x9c   :  { %1225 = vpow2.f32 %v1150_v56  ;;  %v292_v2 = vadd.f32 %v287_v57, %v161_v0 }
  0x9e   :  { %v1151_v16 = vmul.f32 -1.442695, %v292_v2 }
  0x9f   :  { %v276_v58 = vpop.f32.mrf.mxu2 }
  0xa2   :  { %v1226_v59 = vpop.eup %1225 }
  0xa3   :  { %v289_v60 = vpop.f32.mrf.mxu3  ;;  %v296_v61 = vadd.f32 1.0, %v1226_v59 }
  0xa5   :  { %1227 = vrcp.f32 %v296_v61  ;;  %v308_v5 = vand.u32 2147483648, %v296_v61  ;;  %v306_v7 = vand.u32 2147483647, %v296_v61  ;;  %vm302_vm2 = vweird.f32 %v296_v61 }
  0xa6   :  { %1229 = vtanh.f32 %v292_v2 }
  0xa7   :  { %v309_v11 = vor.u32 1.1754944e-38, %v308_v5  ;;  %vm307_vm4 = vcmp.eq.f32.partialorder %v306_v7, 8.507059e+37  ;;  %1231 = vpow2.f32 %v1151_v16 }
  0xab   :  { %v1228_v1 = vpop.eup %1227 }
  0xac   :  { %v298_v3 = vmul.f32 %v1228_v1, %v296_v61  ;;  %vm303_vm1 = vweird.f32 %v1228_v1  ;;  %v1230_v10 = vpop.eup %1229 }
  0xad   :  { %vm304_vm3 = vmor %vm302_vm2, %vm303_vm1  ;;  %v1232_v18 = vpop.eup %1231 }
  0xae   :  { %v299_v4 = vsub.f32 1.0, %v298_v3  ;;  %v316_v20 = vadd.f32 1.0, %v1232_v18 }
  0xb0   :  { %v300_v6 = vmul.f32 %v1228_v1, %v299_v4  ;;  %1233 = vrcp.f32 %v316_v20  ;;  %vm322_vm5 = vweird.f32 %v316_v20  ;;  %v328_v28 = vand.u32 2147483648, %v316_v20 }
  0xb1   :  { %v326_v32 = vand.u32 2147483647, %v316_v20 }
  0xb2   :  { %v301_v9 = vadd.f32 %v1228_v1, %v300_v6  ;;  %v329_v33 = vor.u32 1.1754944e-38, %v328_v28 }
  0xb3   :  { %vm327_vm8 = vcmp.eq.f32.partialorder %v326_v32, 8.507059e+37 }
  0xb4   :  { %v305_v12 = vsel %vm304_vm3, %v1228_v1, %v301_v9  ;;  %v162_v1 = vpop.f32.mrf.mxu1 }
  0xb5   :  { %v310_v13 = vsel %vm307_vm4, %v309_v11, %v305_v12  ;;  %v163_v2 = vadd.f32 %v162_v1, %v1529_v62 }
  0xb6   :  { %v333_v15 = vmul.f32 %v1230_v10, %v310_v13  ;;  %v1234_v21 = vpop.eup %1233  ;;  %v332_v25 = vmul.f32 0.0, %v310_v13 }
  0xb7   :  { %v318_v22 = vmul.f32 %v1234_v21, %v316_v20  ;;  %vm323_vm6 = vweird.f32 %v1234_v21 }
  0xb8   :  { %335 = vrot.lane.b32.xlu0 %v333_v15, %s1322_s4  ;;  %vm324_vm7 = vmor %vm322_vm5, %vm323_vm6 }
  0xb9   :  { %v319_v23 = vsub.f32 1.0, %v318_v22 }
  0xbb   :  { %v320_v24 = vmul.f32 %v1234_v21, %v319_v23 }
  0xbc   :  { %v165_v1 = vpop.f32.mrf.mxu1 }
  0xbd   :  { %v321_v29 = vadd.f32 %v1234_v21, %v320_v24 }
  0xbf   :  { %v325_v34 = vsel %vm324_vm7, %v1234_v21, %v321_v29 }
  0xc0   :  { %204 = vperm.xlu0 %1223, %v194_v17   ;;  %v330_v36 = vsel %vm327_vm8, %v329_v33, %v325_v34 }
 0x12a   :  { %v336_v26 = vpop.permute.xlu0 %335 }
 0x12b   :  { %v338_v27 = vadd.f32 %v336_v26, %v332_v25 }
 0x12d   :  { %1235 = vtanh.f32 %v338_v27 }
 0x132   :  { %v1541_v46 = vpop.permute.xlu0 %204 }
 0x133   :  { %v1236_v35 = vpop.eup %1235  ;;  %vm206_vm10 = vcmp.lt.s32.totalorder %v195_v45, %v1541_v46  ;;  %v196_v45 = vperm.slane %v187_v43, 0  ;;  %v197_v43 = vperm.slane %v188_v42, 0 }
 0x134   :  { %v340_v37 = vmul.f32 %v1236_v35, %v330_v36 }
 0x135   :  { %vm207_vm4 = vcmp.lt.s32.totalorder %v196_v45, %v1541_v46 }
 0x136   :  { %347 = vrot.lane.b32.xlu1 %v340_v37, %s1322_s4 }
 0x13e   :  { %342 = vrot.lane.b32.xlu1 %v338_v27, %s1322_s4 }
 0x1a8   :  { %v348_v47 = vpop.permute.xlu1 %347 }
 0x1a9   :  { %v1544_v49 = vsel %vm206_vm10, %v348_v47, 0.0 }
 0x1aa   :  { %v351_v50 = vpack.c.bf16 %v1544_v49, %v1544_v49 }
 0x1ac   :  { %1152 = vmatmul.msk.bf16.vlgmr.msrb.gmra.mxu2 %vm109_vm0, %v351_v50  ;;  %1153 = vmatmul.msk.bf16.vlgmr.msrb.gmra.mxu3 %vm109_vm0, %v351_v50 }
 0x1ad   :  { %547 = vmatpush.bf16.msrb.mxu2 %v1382_v8  ;;  %560 = vmatpush.bf16.msrb.mxu3 %v1411_v19 }
 0x1b0   :  { %v343_v52 = vpop.permute.xlu1 %342 }
 0x1b1   :  { %v1552_v53 = vsel %vm206_vm10, %v343_v52, 0.0  ;;  %548 = vmatpush.bf16.msrb.mxu2 %v1397_v14  ;;  %561 = vmatpush.bf16.msrb.mxu3 %v1441_v31 }
 0x1b2   :  { %423 = vrot.lane.b32.xlu2 %v1552_v53, %s1322_s4 }
 0x1b5   :  { %549 = vmatpush.bf16.msrb.mxu2 %v1439_v30  ;;  %562 = vmatpush.bf16.msrb.mxu3 %v1462_v40 }
 0x1b9   :  { %550 = vmatpush.bf16.msrb.mxu2 %v1465_v41  ;;  %563 = vmatpush.bf16.msrb.mxu3 %v1483_v48 }
 0x20c   :  { %v424_v24 = vpop.permute.xlu2 %423 }
 0x22f   :  { %v364_v56 = vpop.f32.mrf.mxu2  ;;  %v377_v57 = vpop.f32.mrf.mxu3 }
 0x230   :  { %v381_v58 = vadd.f32 %v364_v56, %v134_v55  ;;  %v382_v4 = vadd.f32 %v377_v57, %v163_v2  ;;  %v166_v2 = vadd.f32 %v165_v1, %v1529_v62 }
 0x232   :  { %v1154_v59 = vmul.f32 -1.442695, %v381_v58  ;;  %v1155_v18 = vmul.f32 -1.442695, %v382_v4 }
 0x234   :  { %1237 = vpow2.f32 %v1154_v59 }
 0x237   :  { %v366_v60 = vpop.f32.mrf.mxu2  ;;  %v379_v61 = vpop.f32.mrf.mxu3 }
 0x23a   :  { %v1238_v63 = vpop.eup %1237 }
 0x23b   :  { %v386_v0 = vadd.f32 1.0, %v1238_v63 }
 0x23d   :  { %1239 = vrcp.f32 %v386_v0  ;;  %v398_v7 = vand.u32 2147483648, %v386_v0  ;;  %v396_v10 = vand.u32 2147483647, %v386_v0  ;;  %vm392_vm12 = vweird.f32 %v386_v0 }
 0x23e   :  { %1241 = vtanh.f32 %v382_v4 }
 0x23f   :  { %v399_v12 = vor.u32 1.1754944e-38, %v398_v7  ;;  %vm397_vm14 = vcmp.eq.f32.partialorder %v396_v10, 8.507059e+37  ;;  %1243 = vpow2.f32 %v1155_v18 }
 0x243   :  { %v1240_v3 = vpop.eup %1239 }
 0x244   :  { %v388_v5 = vmul.f32 %v1240_v3, %v386_v0  ;;  %vm393_vm11 = vweird.f32 %v1240_v3  ;;  %v1242_v15 = vpop.eup %1241 }
 0x245   :  { %vm394_vm13 = vmor %vm392_vm12, %vm393_vm11  ;;  %v1244_v20 = vpop.eup %1243 }
 0x246   :  { %v389_v6 = vsub.f32 1.0, %v388_v5  ;;  %v406_v21 = vadd.f32 1.0, %v1244_v20 }
 0x248   :  { %v390_v9 = vmul.f32 %v1240_v3, %v389_v6  ;;  %1245 = vrcp.f32 %v406_v21  ;;  %v418_v33 = vand.u32 2147483648, %v406_v21  ;;  %vm412_vm1 = vweird.f32 %v406_v21 }
 0x249   :  { %v416_v34 = vand.u32 2147483647, %v406_v21 }
 0x24a   :  { %v391_v11 = vadd.f32 %v1240_v3, %v390_v9  ;;  %v419_v36 = vor.u32 1.1754944e-38, %v418_v33 }
 0x24b   :  { %vm417_vm3 = vcmp.eq.f32.partialorder %v416_v34, 8.507059e+37 }
 0x24c   :  { %v395_v13 = vsel %vm394_vm13, %v1240_v3, %v391_v11  ;;  %vm208_vm13 = vcmp.lt.s32.totalorder %v197_v43, %v1541_v46 }
 0x24d   :  { %v400_v16 = vsel %vm397_vm14, %v399_v12, %v395_v13 }
 0x24e   :  { %v427_v17 = vmul.f32 %v1242_v15, %v400_v16  ;;  %v1246_v22 = vpop.eup %1245  ;;  %v426_v27 = vmul.f32 %v424_v24, %v400_v16 }
 0x24f   :  { %v408_v23 = vmul.f32 %v1246_v22, %v406_v21  ;;  %vm413_vm15 = vweird.f32 %v1246_v22 }
 0x250   :  { %429 = vrot.lane.b32.xlu2 %v427_v17, %s1322_s4  ;;  %vm414_vm2 = vmor %vm412_vm1, %vm413_vm15 }
 0x251   :  { %v409_v25 = vsub.f32 1.0, %v408_v23 }
 0x253   :  { %v410_v26 = vmul.f32 %v1246_v22, %v409_v25 }
 0x255   :  { %v411_v32 = vadd.f32 %v1246_v22, %v410_v26 }
 0x257   :  { %v415_v35 = vsel %vm414_vm2, %v1246_v22, %v411_v32 }
 0x258   :  { %v420_v38 = vsel %vm417_vm3, %v419_v36, %v415_v35 }
 0x2aa   :  { %v430_v28 = vpop.permute.xlu2 %429 }
 0x2ab   :  { %v432_v29 = vadd.f32 %v430_v28, %v426_v27 }
 0x2ad   :  { %1247 = vtanh.f32 %v432_v29  ;;  %436 = vrot.lane.b32.xlu2 %v432_v29, %s1322_s4 }
 0x2b3   :  { %v1248_v37 = vpop.eup %1247 }
 0x2b4   :  { %v434_v39 = vmul.f32 %v1248_v37, %v420_v38 }
 0x2b6   :  { %441 = vrot.lane.b32.xlu1 %v434_v39, %s1322_s4 }
 0x307   :  { %v437_v47 = vpop.permute.xlu2 %436 }
 0x308   :  { %v1575_v50 = vsel %vm207_vm4, %v437_v47, %v1552_v53 }
 0x309   :  { %517 = vrot.lane.b32.xlu0 %v1575_v50, %s1322_s4 }
 0x328   :  { %v442_v52 = vpop.permute.xlu1 %441 }
 0x329   :  { %v1580_v54 = vsel %vm207_vm4, %v442_v52, %v1544_v49  ;;  %v136_v49 = vpop.f32.mrf.mxu0 }
 0x32a   :  { %v445_v55 = vpack.c.bf16 %v1580_v54, %v1580_v54  ;;  %v137_v53 = vadd.f32 %v136_v49, %v1526_v51 }
 0x32c   :  { %1156 = vmatmul.msk.bf16.vlgmr.msra.gmra.mxu2 %vm109_vm0, %v445_v55  ;;  %1157 = vmatmul.msk.bf16.vlgmr.msra.gmra.mxu3 %vm109_vm0, %v445_v55 }
 0x32d   :  { %735 = vmatpush.bf16.msra.mxu2 %v1382_v8  ;;  %748 = vmatpush.bf16.msra.mxu3 %v1411_v19 }
 0x331   :  { %736 = vmatpush.bf16.msra.mxu2 %v1397_v14  ;;  %749 = vmatpush.bf16.msra.mxu3 %v1441_v31 }
 0x335   :  { %737 = vmatpush.bf16.msra.mxu2 %v1439_v30  ;;  %750 = vmatpush.bf16.msra.mxu3 %v1462_v40 }
 0x339   :  { %738 = vmatpush.bf16.msra.mxu2 %v1465_v41  ;;  %751 = vmatpush.bf16.msra.mxu3 %v1483_v48 }
 0x37b   :  { %v518_v25 = vpop.permute.xlu0 %517 }
 0x3af   :  { %v458_v56 = vpop.f32.mrf.mxu2  ;;  %v471_v57 = vpop.f32.mrf.mxu3 }
 0x3b0   :  { %v475_v58 = vadd.f32 %v458_v56, %v137_v53  ;;  %v476_v4 = vadd.f32 %v471_v57, %v166_v2  ;;  %v167_v57 = vpop.f32.mrf.mxu1 }
 0x3b2   :  { %v1158_v59 = vmul.f32 -1.442695, %v475_v58  ;;  %v1159_v18 = vmul.f32 -1.442695, %v476_v4  ;;  %v168_v58 = vadd.f32 %v167_v57, %v1529_v62 }
 0x3b4   :  { %1249 = vpow2.f32 %v1158_v59 }
 0x3b7   :  { %v460_v60 = vpop.f32.mrf.mxu2  ;;  %v473_v61 = vpop.f32.mrf.mxu3 }
 0x3ba   :  { %v1250_v63 = vpop.eup %1249 }
 0x3bb   :  { %v480_v0 = vadd.f32 1.0, %v1250_v63 }
 0x3bd   :  { %1251 = vrcp.f32 %v480_v0  ;;  %v492_v7 = vand.u32 2147483648, %v480_v0  ;;  %v490_v10 = vand.u32 2147483647, %v480_v0  ;;  %vm486_vm6 = vweird.f32 %v480_v0 }
 0x3be   :  { %1253 = vtanh.f32 %v476_v4 }
 0x3bf   :  { %v493_v12 = vor.u32 1.1754944e-38, %v492_v7  ;;  %vm491_vm8 = vcmp.eq.f32.partialorder %v490_v10, 8.507059e+37  ;;  %1255 = vpow2.f32 %v1159_v18 }
 0x3c3   :  { %v1252_v3 = vpop.eup %1251 }
 0x3c4   :  { %v482_v5 = vmul.f32 %v1252_v3, %v480_v0  ;;  %vm487_vm5 = vweird.f32 %v1252_v3  ;;  %v1254_v15 = vpop.eup %1253 }
 0x3c5   :  { %vm488_vm7 = vmor %vm486_vm6, %vm487_vm5  ;;  %v1256_v20 = vpop.eup %1255 }
 0x3c6   :  { %v483_v6 = vsub.f32 1.0, %v482_v5  ;;  %v500_v21 = vadd.f32 1.0, %v1256_v20 }
 0x3c8   :  { %v484_v9 = vmul.f32 %v1252_v3, %v483_v6  ;;  %1257 = vrcp.f32 %v500_v21  ;;  %v512_v33 = vand.u32 2147483648, %v500_v21  ;;  %vm506_vm10 = vweird.f32 %v500_v21 }
 0x3c9   :  { %v510_v34 = vand.u32 2147483647, %v500_v21 }
 0x3ca   :  { %v485_v11 = vadd.f32 %v1252_v3, %v484_v9  ;;  %v513_v36 = vor.u32 1.1754944e-38, %v512_v33  ;;  %v189_v33 = vrot.slane %v1538_v44, 3 }
 0x3cb   :  { %vm511_vm12 = vcmp.eq.f32.partialorder %v510_v34, 8.507059e+37 }
 0x3cc   :  { %v489_v13 = vsel %vm488_vm7, %v1252_v3, %v485_v11  ;;  %v1199_v11 = vld [vmem:[%s1750_s0 + $0x10] sm:$0xff]  ;;  %v198_v34 = vperm.slane %v189_v33, 0 }
 0x3cd   :  { %v494_v16 = vsel %vm491_vm8, %v493_v12, %v489_v13  ;;  %1112 = vmatmul.msk.bf16.gmra.mxu0 %vm109_vm0, %v1199_v11  ;;  %1116 = vmatmul.msk.bf16.gmra.mxu1 %vm109_vm0, %v1199_v11 }
 0x3ce   :  { %v521_v17 = vmul.f32 %v1254_v15, %v494_v16  ;;  %v1258_v22 = vpop.eup %1257  ;;  %v520_v27 = vmul.f32 %v518_v25, %v494_v16  ;;  %v1200_v16 = vld [vmem:[%s1750_s0 + $0x18] sm:$0xff]  ;;  %vm209_vm7 = vcmp.lt.s32.totalorder %v198_v34, %v1541_v46 }
 0x3cf   :  { %v502_v23 = vmul.f32 %v1258_v22, %v500_v21  ;;  %vm507_vm9 = vweird.f32 %v1258_v22 }
 0x3d0   :  { %523 = vrot.lane.b32.xlu1 %v521_v17, %s1322_s4  ;;  %vm508_vm11 = vmor %vm506_vm10, %vm507_vm9 }
 0x3d1   :  { %v503_v24 = vsub.f32 1.0, %v502_v23 }
 0x3d3   :  { %v504_v26 = vmul.f32 %v1258_v22, %v503_v24 }
 0x3d5   :  { %v505_v32 = vadd.f32 %v1258_v22, %v504_v26 }
 0x3d7   :  { %v509_v35 = vsel %vm508_vm11, %v1258_v22, %v505_v32 }
 0x3d8   :  { %v514_v38 = vsel %vm511_vm12, %v513_v36, %v509_v35 }
 0x3dd   :  { %1113 = vmatmul.msk.bf16.gmra.mxu0 %vm109_vm0, %v1200_v16  ;;  %1117 = vmatmul.msk.bf16.gmra.mxu1 %vm109_vm0, %v1200_v16 }
 0x442   :  { %v524_v28 = vpop.permute.xlu1 %523 }
 0x443   :  { %v526_v29 = vadd.f32 %v524_v28, %v520_v27 }
 0x445   :  { %1259 = vtanh.f32 %v526_v29  ;;  %530 = vrot.lane.b32.xlu0 %v526_v29, %s1322_s4 }
 0x44a   :  { %v170_v42 = vpop.f32.mrf.mxu1 }
 0x44b   :  { %v1260_v37 = vpop.eup %1259  ;;  %v171_v57 = vadd.f32 %v170_v42, %v1529_v62 }
 0x44c   :  { %v528_v39 = vmul.f32 %v1260_v37, %v514_v38 }
 0x44e   :  { %535 = vrot.lane.b32.xlu2 %v528_v39, %s1322_s4 }
 0x4a8   :  { %v536_v45 = vpop.permute.xlu2 %535 }
 0x4a9   :  { %v1602_v47 = vsel %vm208_vm13, %v536_v45, %v1580_v54  ;;  %v1650_v45 = vpop.f32.mrf.mxu1 }
 0x4aa   :  { %v539_v52 = vpack.c.bf16 %v1602_v47, %v1602_v47 }
 0x4ac   :  { %1160 = vmatmul.msk.bf16.vlgmr.msrb.gmra.mxu2 %vm109_vm0, %v539_v52  ;;  %1161 = vmatmul.msk.bf16.vlgmr.msrb.gmra.mxu3 %vm109_vm0, %v539_v52 }
 0x4ad   :  { %923 = vmatpush.bf16.msrb.mxu2 %v1382_v8  ;;  %936 = vmatpush.bf16.msrb.mxu3 %v1411_v19  ;;  %v138_v8 = vpop.f32.mrf.mxu0 }
 0x4b1   :  { %924 = vmatpush.bf16.msrb.mxu2 %v1397_v14  ;;  %937 = vmatpush.bf16.msrb.mxu3 %v1441_v31  ;;  %v139_v14 = vadd.f32 %v138_v8, %v1526_v51 }
 0x4b5   :  { %925 = vmatpush.bf16.msrb.mxu2 %v1439_v30  ;;  %938 = vmatpush.bf16.msrb.mxu3 %v1462_v40  ;;  %v141_v43 = vpop.f32.mrf.mxu0 }
 0x4b7   :  { %v531_v54 = vpop.permute.xlu0 %530 }
 0x4b8   :  { %v1615_v55 = vsel %vm208_vm13, %v531_v54, %v1575_v50  ;;  %v1654_v54 = vpop.f32.mrf.mxu1 }
 0x4b9   :  { %611 = vrot.lane.b32.xlu1 %v1615_v55, %s1322_s4  ;;  %926 = vmatpush.bf16.msrb.mxu2 %v1465_v41 }
 0x4ba   :  { %939 = vmatpush.bf16.msrb.mxu3 %v1483_v48 }
 0x4bd   :  { %v1652_v52 = vpop.f32.mrf.mxu0 }
 0x4c0   :  { %v1658_v8 = vpop.f32.mrf.mxu1 }
 0x52b   :  { %v612_v17 = vpop.permute.xlu1 %611 }
 0x52f   :  { %v552_v19 = vpop.f32.mrf.mxu2  ;;  %v565_v31 = vpop.f32.mrf.mxu3 }
 0x530   :  { %v569_v49 = vadd.f32 %v552_v19, %v139_v14  ;;  %v570_v41 = vadd.f32 %v565_v31, %v168_v58  ;;  %v142_v14 = vadd.f32 %v141_v43, %v1526_v51 }
 0x532   :  { %v1162_v30 = vmul.f32 -1.442695, %v569_v49  ;;  %v1163_v7 = vmul.f32 -1.442695, %v570_v41 }
 0x534   :  { %1261 = vpow2.f32 %v1162_v30 }
 0x537   :  { %v554_v40 = vpop.f32.mrf.mxu2  ;;  %v567_v53 = vpop.f32.mrf.mxu3 }
 0x53a   :  { %v1262_v56 = vpop.eup %1261 }
 0x53b   :  { %v574_v50 = vadd.f32 1.0, %v1262_v56 }
 0x53d   :  { %1263 = vrcp.f32 %v574_v50  ;;  %v586_v61 = vand.u32 2147483648, %v574_v50  ;;  %v584_v0 = vand.u32 2147483647, %v574_v50  ;;  %vm580_vm15 = vweird.f32 %v574_v50 }
 0x53e   :  { %1265 = vtanh.f32 %v570_v41 }
 0x53f   :  { %v587_v2 = vor.u32 1.1754944e-38, %v586_v61  ;;  %vm585_vm2 = vcmp.eq.f32.partialorder %v584_v0, 8.507059e+37  ;;  %1267 = vpow2.f32 %v1163_v7 }
 0x543   :  { %v1264_v59 = vpop.eup %1263 }
 0x544   :  { %v576_v60 = vmul.f32 %v1264_v59, %v574_v50  ;;  %vm581_vm14 = vweird.f32 %v1264_v59  ;;  %v1266_v4 = vpop.eup %1265 }
 0x545   :  { %vm582_vm1 = vmor %vm580_vm15, %vm581_vm14  ;;  %v1268_v9 = vpop.eup %1267 }
 0x546   :  { %v577_v48 = vsub.f32 1.0, %v576_v60  ;;  %v594_v10 = vadd.f32 1.0, %v1268_v9 }
 0x548   :  { %v578_v63 = vmul.f32 %v1264_v59, %v577_v48  ;;  %1269 = vrcp.f32 %v594_v10  ;;  %v606_v24 = vand.u32 2147483648, %v594_v10  ;;  %vm600_vm4 = vweird.f32 %v594_v10 }
 0x549   :  { %v604_v25 = vand.u32 2147483647, %v594_v10 }
 0x54a   :  { %v579_v1 = vadd.f32 %v1264_v59, %v578_v63  ;;  %v607_v27 = vor.u32 1.1754944e-38, %v606_v24 }
 0x54b   :  { %vm605_vm6 = vcmp.eq.f32.partialorder %v604_v25, 8.507059e+37 }
 0x54c   :  { %v583_v3 = vsel %vm582_vm1, %v1264_v59, %v579_v1 }
 0x54d   :  { %v588_v5 = vsel %vm585_vm2, %v587_v2, %v583_v3 }
 0x54e   :  { %v615_v6 = vmul.f32 %v1266_v4, %v588_v5  ;;  %v1270_v12 = vpop.eup %1269  ;;  %v614_v20 = vmul.f32 %v612_v17, %v588_v5 }
 0x54f   :  { %v596_v13 = vmul.f32 %v1270_v12, %v594_v10  ;;  %vm601_vm3 = vweird.f32 %v1270_v12 }
 0x550   :  { %617 = vrot.lane.b32.xlu2 %v615_v6, %s1322_s4  ;;  %vm602_vm5 = vmor %vm600_vm4, %vm601_vm3 }
 0x551   :  { %v597_v15 = vsub.f32 1.0, %v596_v13 }
 0x553   :  { %v598_v18 = vmul.f32 %v1270_v12, %v597_v15 }
 0x555   :  { %v599_v23 = vadd.f32 %v1270_v12, %v598_v18 }
 0x557   :  { %v603_v26 = vsel %vm602_vm5, %v1270_v12, %v599_v23 }
 0x558   :  { %v608_v29 = vsel %vm605_vm6, %v607_v27, %v603_v26 }
 0x5aa   :  { %v618_v21 = vpop.permute.xlu2 %617 }
 0x5ab   :  { %v620_v22 = vadd.f32 %v618_v21, %v614_v20 }
 0x5ad   :  { %1271 = vtanh.f32 %v620_v22  ;;  %624 = vrot.lane.b32.xlu1 %v620_v22, %s1322_s4 }
 0x5b3   :  { %v1272_v28 = vpop.eup %1271 }
 0x5b4   :  { %v622_v32 = vmul.f32 %v1272_v28, %v608_v29  ;;  %v190_v28 = vrot.slane %v1538_v44, 4 }
 0x5b6   :  { %629 = vrot.lane.b32.xlu0 %v622_v32, %s1322_s4  ;;  %v199_v29 = vperm.slane %v190_v28, 0 }
 0x5b8   :  { %vm210_vm1 = vcmp.lt.s32.totalorder %v199_v29, %v1541_v46 }
 0x61f   :  { %v625_v35 = vpop.permute.xlu1 %624 }
 0x620   :  { %v1639_v36 = vsel %vm209_vm7, %v625_v35, %v1615_v55  ;;  %v1656_v55 = vpop.f32.mrf.mxu0 }
 0x621   :  { %705 = vrot.lane.b32.xlu2 %v1639_v36, %s1322_s4  ;;  %v147_v28 = vadd.f32 %v1656_v55, %v1526_v51 }
 0x628   :  { %v630_v37 = vpop.permute.xlu0 %629 }
 0x629   :  { %v1644_v38 = vsel %vm209_vm7, %v630_v37, %v1602_v47  ;;  %v1660_v47 = vpop.f32.mrf.mxu0 }
 0x62a   :  { %v633_v39 = vpack.c.bf16 %v1644_v38, %v1644_v38 }
 0x62c   :  { %1164 = vmatmul.msk.bf16.vlgmr.msrb.gmra.mxu0 %vm109_vm0, %v633_v39  ;;  %1165 = vmatmul.msk.bf16.vlgmr.msrb.gmra.mxu1 %vm109_vm0, %v633_v39  ;;  %v144_v39 = vadd.f32 %v1652_v52, %v1526_v51 }
 0x67b   :  { %v706_v13 = vpop.permute.xlu2 %705 }
 0x6a9   :  { %v646_v19 = vpop.f32.mrf.mxu0  ;;  %v659_v31 = vpop.f32.mrf.mxu1 }
 0x6aa   :  { %v663_v49 = vadd.f32 %v646_v19, %v142_v14  ;;  %v664_v59 = vadd.f32 %v659_v31, %v171_v57 }
 0x6ac   :  { %v1166_v30 = vmul.f32 -1.442695, %v663_v49  ;;  %v1167_v6 = vmul.f32 -1.442695, %v664_v59 }
 0x6ae   :  { %1273 = vpow2.f32 %v1166_v30  ;;  %v173_v30 = vadd.f32 %v1650_v45, %v1529_v62 }
 0x6b1   :  { %v648_v40 = vpop.f32.mrf.mxu0  ;;  %v661_v53 = vpop.f32.mrf.mxu1 }
 0x6b4   :  { %v1274_v56 = vpop.eup %1273 }
 0x6b5   :  { %v668_v50 = vadd.f32 1.0, %v1274_v56 }
 0x6b7   :  { %1275 = vrcp.f32 %v668_v50  ;;  %v680_v48 = vand.u32 2147483648, %v668_v50  ;;  %v678_v63 = vand.u32 2147483647, %v668_v50  ;;  %vm674_vm9 = vweird.f32 %v668_v50 }
 0x6b8   :  { %1277 = vtanh.f32 %v664_v59 }
 0x6b9   :  { %v681_v1 = vor.u32 1.1754944e-38, %v680_v48  ;;  %vm679_vm11 = vcmp.eq.f32.partialorder %v678_v63, 8.507059e+37  ;;  %1279 = vpow2.f32 %v1167_v6 }
 0x6bd   :  { %v1276_v58 = vpop.eup %1275 }
 0x6be   :  { %v670_v41 = vmul.f32 %v1276_v58, %v668_v50  ;;  %vm675_vm8 = vweird.f32 %v1276_v58  ;;  %v1278_v3 = vpop.eup %1277 }
 0x6bf   :  { %vm676_vm10 = vmor %vm674_vm9, %vm675_vm8  ;;  %v1280_v7 = vpop.eup %1279 }
 0x6c0   :  { %v671_v60 = vsub.f32 1.0, %v670_v41  ;;  %v688_v9 = vadd.f32 1.0, %v1280_v7 }
 0x6c2   :  { %v672_v61 = vmul.f32 %v1276_v58, %v671_v60  ;;  %1281 = vrcp.f32 %v688_v9  ;;  %v700_v21 = vand.u32 2147483648, %v688_v9  ;;  %vm694_vm13 = vweird.f32 %v688_v9 }
 0x6c3   :  { %v698_v22 = vand.u32 2147483647, %v688_v9 }
 0x6c4   :  { %v673_v0 = vadd.f32 %v1276_v58, %v672_v61  ;;  %v701_v24 = vor.u32 1.1754944e-38, %v700_v21  ;;  %v191_v21 = vrot.slane %v1538_v44, 5 }
 0x6c5   :  { %vm699_vm15 = vcmp.eq.f32.partialorder %v698_v22, 8.507059e+37 }
 0x6c6   :  { %v677_v2 = vsel %vm676_vm10, %v1276_v58, %v673_v0  ;;  %v200_v22 = vperm.slane %v191_v21, 0 }
 0x6c7   :  { %v682_v4 = vsel %vm679_vm11, %v681_v1, %v677_v2 }
 0x6c8   :  { %v709_v5 = vmul.f32 %v1278_v3, %v682_v4  ;;  %v1282_v10 = vpop.eup %1281  ;;  %v708_v16 = vmul.f32 %v706_v13, %v682_v4  ;;  %vm211_vm10 = vcmp.lt.s32.totalorder %v200_v22, %v1541_v46 }
 0x6c9   :  { %v690_v11 = vmul.f32 %v1282_v10, %v688_v9  ;;  %vm695_vm12 = vweird.f32 %v1282_v10 }
 0x6ca   :  { %711 = vrot.lane.b32.xlu0 %v709_v5, %s1322_s4  ;;  %vm696_vm14 = vmor %vm694_vm13, %vm695_vm12 }
 0x6cb   :  { %v691_v12 = vsub.f32 1.0, %v690_v11 }
 0x6cd   :  { %v692_v15 = vmul.f32 %v1282_v10, %v691_v12 }
 0x6cf   :  { %v693_v20 = vadd.f32 %v1282_v10, %v692_v15 }
 0x6d1   :  { %v697_v23 = vsel %vm696_vm14, %v1282_v10, %v693_v20 }
 0x6d2   :  { %v702_v26 = vsel %vm699_vm15, %v701_v24, %v697_v23 }
 0x73c   :  { %v712_v17 = vpop.permute.xlu0 %711 }
 0x73d   :  { %v714_v18 = vadd.f32 %v712_v17, %v708_v16 }
 0x73f   :  { %1283 = vtanh.f32 %v714_v18  ;;  %718 = vrot.lane.b32.xlu2 %v714_v18, %s1322_s4 }
 0x745   :  { %v1284_v25 = vpop.eup %1283 }
 0x746   :  { %v716_v27 = vmul.f32 %v1284_v25, %v702_v26 }
 0x748   :  { %723 = vrot.lane.b32.xlu1 %v716_v27, %s1322_s4 }
 0x799   :  { %v719_v32 = vpop.permute.xlu2 %718 }
 0x79a   :  { %v1670_v33 = vsel %vm210_vm1, %v719_v32, %v1639_v36 }
 0x79b   :  { %799 = vrot.lane.b32.xlu0 %v1670_v33, %s1322_s4 }
 0x7ba   :  { %v724_v34 = vpop.permute.xlu1 %723 }
 0x7bb   :  { %v1675_v35 = vsel %vm210_vm1, %v724_v34, %v1644_v38 }
 0x7bc   :  { %v727_v37 = vpack.c.bf16 %v1675_v35, %v1675_v35 }
 0x7be   :  { %1168 = vmatmul.msk.bf16.vlgmr.msra.gmra.mxu2 %vm109_vm0, %v727_v37  ;;  %1169 = vmatmul.msk.bf16.vlgmr.msra.gmra.mxu3 %vm109_vm0, %v727_v37 }
 0x80d   :  { %v800_v5 = vpop.permute.xlu0 %799 }
 0x841   :  { %v740_v42 = vpop.f32.mrf.mxu2  ;;  %v753_v36 = vpop.f32.mrf.mxu3 }
 0x842   :  { %v757_v43 = vadd.f32 %v740_v42, %v144_v39  ;;  %v758_v53 = vadd.f32 %v753_v36, %v173_v30 }
 0x844   :  { %v1170_v14 = vmul.f32 -1.442695, %v757_v43  ;;  %v1171_v45 = vmul.f32 -1.442695, %v758_v53 }
 0x846   :  { %1285 = vpow2.f32 %v1170_v14 }
 0x849   :  { %v742_v19 = vpop.f32.mrf.mxu2  ;;  %v755_v31 = vpop.f32.mrf.mxu3 }
 0x84c   :  { %v1286_v49 = vpop.eup %1285 }
 0x84d   :  { %v762_v38 = vadd.f32 1.0, %v1286_v49 }
 0x84f   :  { %1287 = vrcp.f32 %v762_v38  ;;  %v774_v57 = vand.u32 2147483648, %v762_v38  ;;  %v772_v58 = vand.u32 2147483647, %v762_v38  ;;  %vm768_vm3 = vweird.f32 %v762_v38 }
 0x850   :  { %1289 = vtanh.f32 %v758_v53 }
 0x851   :  { %v775_v41 = vor.u32 1.1754944e-38, %v774_v57  ;;  %vm773_vm5 = vcmp.eq.f32.partialorder %v772_v58, 8.507059e+37  ;;  %1291 = vpow2.f32 %v1171_v45 }
 0x855   :  { %v1288_v40 = vpop.eup %1287 }
 0x856   :  { %v764_v56 = vmul.f32 %v1288_v40, %v762_v38  ;;  %vm769_vm2 = vweird.f32 %v1288_v40  ;;  %v1290_v48 = vpop.eup %1289 }
 0x857   :  { %vm770_vm4 = vmor %vm768_vm3, %vm769_vm2  ;;  %v1292_v0 = vpop.eup %1291 }
 0x858   :  { %v765_v50 = vsub.f32 1.0, %v764_v56  ;;  %v782_v1 = vadd.f32 1.0, %v1292_v0 }
 0x85a   :  { %v766_v52 = vmul.f32 %v1288_v40, %v765_v50  ;;  %1293 = vrcp.f32 %v782_v1  ;;  %v794_v12 = vand.u32 2147483648, %v782_v1  ;;  %vm788_vm7 = vweird.f32 %v782_v1 }
 0x85b   :  { %v792_v13 = vand.u32 2147483647, %v782_v1 }
 0x85c   :  { %v767_v59 = vadd.f32 %v1288_v40, %v766_v52  ;;  %v795_v16 = vor.u32 1.1754944e-38, %v794_v12 }
 0x85d   :  { %vm793_vm9 = vcmp.eq.f32.partialorder %v792_v13, 8.507059e+37 }
 0x85e   :  { %v771_v60 = vsel %vm770_vm4, %v1288_v40, %v767_v59 }
 0x85f   :  { %v776_v61 = vsel %vm773_vm5, %v775_v41, %v771_v60 }
 0x860   :  { %v803_v63 = vmul.f32 %v1290_v48, %v776_v61  ;;  %v1294_v2 = vpop.eup %1293  ;;  %v802_v7 = vmul.f32 %v800_v5, %v776_v61 }
 0x861   :  { %v784_v3 = vmul.f32 %v1294_v2, %v782_v1  ;;  %vm789_vm6 = vweird.f32 %v1294_v2 }
 0x862   :  { %805 = vrot.lane.b32.xlu1 %v803_v63, %s1322_s4  ;;  %vm790_vm8 = vmor %vm788_vm7, %vm789_vm6 }
 0x863   :  { %v785_v4 = vsub.f32 1.0, %v784_v3 }
 0x865   :  { %v786_v6 = vmul.f32 %v1294_v2, %v785_v4 }
 0x867   :  { %v787_v11 = vadd.f32 %v1294_v2, %v786_v6 }
 0x869   :  { %v791_v15 = vsel %vm790_vm8, %v1294_v2, %v787_v11 }
 0x86a   :  { %v796_v18 = vsel %vm793_vm9, %v795_v16, %v791_v15 }
 0x8d4   :  { %v806_v9 = vpop.permute.xlu1 %805 }
 0x8d5   :  { %v808_v10 = vadd.f32 %v806_v9, %v802_v7 }
 0x8d7   :  { %1295 = vtanh.f32 %v808_v10  ;;  %812 = vrot.lane.b32.xlu0 %v808_v10, %s1322_s4  ;;  %v192_v10 = vrot.slane %v1538_v44, 6 }
 0x8d9   :  { %v201_v11 = vperm.slane %v192_v10, 0 }
 0x8db   :  { %vm212_vm4 = vcmp.lt.s32.totalorder %v201_v11, %v1541_v46 }
 0x8dd   :  { %v1296_v17 = vpop.eup %1295 }
 0x8de   :  { %v810_v20 = vmul.f32 %v1296_v17, %v796_v18  ;;  %v149_v18 = vadd.f32 %v1660_v47, %v1526_v51 }
 0x8e0   :  { %817 = vrot.lane.b32.xlu2 %v810_v20, %s1322_s4 }
 0x93a   :  { %v818_v23 = vpop.permute.xlu2 %817 }
 0x93b   :  { %v1691_v24 = vsel %vm211_vm10, %v818_v23, %v1675_v35 }
 0x93c   :  { %v821_v25 = vpack.c.bf16 %v1691_v24, %v1691_v24 }
 0x93e   :  { %1172 = vmatmul.msk.bf16.vlgmr.msra.gmra.mxu0 %vm109_vm0, %v821_v25  ;;  %1173 = vmatmul.msk.bf16.vlgmr.msra.gmra.mxu1 %vm109_vm0, %v821_v25 }
 0x949   :  { %v813_v26 = vpop.permute.xlu0 %812 }
 0x94a   :  { %v1698_v27 = vsel %vm211_vm10, %v813_v26, %v1670_v33  ;;  %v176_v33 = vadd.f32 %v1654_v54, %v1529_v62 }
 0x94b   :  { %893 = vrot.lane.b32.xlu1 %v1698_v27, %s1322_s4 }
 0x9bb   :  { %v834_v29 = vpop.f32.mrf.mxu0  ;;  %v847_v32 = vpop.f32.mrf.mxu1 }
 0x9bc   :  { %v851_v34 = vadd.f32 %v834_v29, %v147_v28  ;;  %v852_v14 = vadd.f32 %v847_v32, %v176_v33  ;;  %v178_v28 = vadd.f32 %v1658_v8, %v1529_v62 }
 0x9bd   :  { %v894_v48 = vpop.permute.xlu1 %893 }
 0x9be   :  { %v1174_v35 = vmul.f32 -1.442695, %v851_v34  ;;  %v1175_v54 = vmul.f32 -1.442695, %v852_v14 }
 0x9c0   :  { %1297 = vpow2.f32 %v1174_v35 }
 0x9c3   :  { %v836_v37 = vpop.f32.mrf.mxu0  ;;  %v849_v39 = vpop.f32.mrf.mxu1 }
 0x9c6   :  { %v1298_v42 = vpop.eup %1297 }
 0x9c7   :  { %v856_v36 = vadd.f32 1.0, %v1298_v42 }
 0x9c9   :  { %1299 = vrcp.f32 %v856_v36  ;;  %v868_v49 = vand.u32 2147483648, %v856_v36  ;;  %v866_v38 = vand.u32 2147483647, %v856_v36  ;;  %vm862_vm12 = vweird.f32 %v856_v36 }
 0x9ca   :  { %1301 = vtanh.f32 %v852_v14 }
 0x9cb   :  { %v869_v40 = vor.u32 1.1754944e-38, %v868_v49  ;;  %vm867_vm14 = vcmp.eq.f32.partialorder %v866_v38, 8.507059e+37  ;;  %1303 = vpow2.f32 %v1175_v54  ;;  %v1219_v49 = vld [vmem:[%s1753_s5 + $0x10] sm:$0xff] }
 0x9cf   :  { %v1300_v43 = vpop.eup %1299 }
 0x9d0   :  { %v858_v19 = vmul.f32 %v1300_v43, %v856_v36  ;;  %vm863_vm11 = vweird.f32 %v1300_v43  ;;  %v1302_v56 = vpop.eup %1301 }
 0x9d1   :  { %vm864_vm13 = vmor %vm862_vm12, %vm863_vm11  ;;  %v1304_v52 = vpop.eup %1303 }
 0x9d2   :  { %v859_v31 = vsub.f32 1.0, %v858_v19  ;;  %v876_v58 = vadd.f32 1.0, %v1304_v52 }
 0x9d4   :  { %v860_v55 = vmul.f32 %v1300_v43, %v859_v31  ;;  %1305 = vrcp.f32 %v876_v58  ;;  %v888_v2 = vand.u32 2147483648, %v876_v58  ;;  %vm882_vm1 = vweird.f32 %v876_v58  ;;  %v1220_v31 = vld [vmem:[%s1753_s5 + $0x18] sm:$0xff] }
 0x9d5   :  { %v886_v3 = vand.u32 2147483647, %v876_v58  ;;  %1048 = vmatpush.bf16.msrb.mxu0 %v1220_v31 }
 0x9d6   :  { %v861_v30 = vadd.f32 %v1300_v43, %v860_v55  ;;  %v889_v5 = vor.u32 1.1754944e-38, %v888_v2  ;;  %v1218_v55 = vld [vmem:[%s1753_s5 + $0x8] sm:$0xff] }
 0x9d7   :  { %vm887_vm3 = vcmp.eq.f32.partialorder %v886_v3, 8.507059e+37 }
 0x9d8   :  { %v865_v53 = vsel %vm864_vm13, %v1300_v43, %v861_v30 }
 0x9d9   :  { %v870_v50 = vsel %vm867_vm14, %v869_v40, %v865_v53  ;;  %1049 = vmatpush.bf16.msrb.mxu0 %v1219_v49  ;;  %v1217_v40 = vld [vmem:[%s1753_s5] sm:$0xff] }
 0x9da   :  { %v897_v57 = vmul.f32 %v1302_v56, %v870_v50  ;;  %v1306_v59 = vpop.eup %1305  ;;  %v896_v63 = vmul.f32 %v894_v48, %v870_v50 }
 0x9db   :  { %v878_v41 = vmul.f32 %v1306_v59, %v876_v58  ;;  %vm883_vm15 = vweird.f32 %v1306_v59 }
 0x9dc   :  { %899 = vrot.lane.b32.xlu2 %v897_v57, %s1322_s4  ;;  %vm884_vm2 = vmor %vm882_vm1, %vm883_vm15 }
 0x9dd   :  { %v879_v60 = vsub.f32 1.0, %v878_v41  ;;  %1050 = vmatpush.bf16.msrb.mxu0 %v1218_v55 }
 0x9df   :  { %v880_v61 = vmul.f32 %v1306_v59, %v879_v60 }
 0x9e1   :  { %v881_v1 = vadd.f32 %v1306_v59, %v880_v61  ;;  %1051 = vmatpush.bf16.msrb.mxu0 %v1217_v40 }
 0x9e3   :  { %v885_v4 = vsel %vm884_vm2, %v1306_v59, %v881_v1 }
 0x9e4   :  { %v890_v7 = vsel %vm887_vm3, %v889_v5, %v885_v4  ;;  %v1224_v5 = vld [vmem:[%s1754_s6] ss:$0 sm:$0xff] }
 0xa36   :  { %v900_v45 = vpop.permute.xlu2 %899 }
 0xa37   :  { %v902_v0 = vadd.f32 %v900_v45, %v896_v63 }
 0xa39   :  { %1307 = vtanh.f32 %v902_v0  ;;  %906 = vrot.lane.b32.xlu1 %v902_v0, %s1322_s4  ;;  %v193_v0 = vrot.slane %v1538_v44, 7 }
 0xa3b   :  { %v202_v1 = vperm.slane %v193_v0, 0 }
 0xa3d   :  { %vm213_vm13 = vcmp.lt.s32.totalorder %v202_v1, %v1541_v46 }
 0xa3f   :  { %v1308_v6 = vpop.eup %1307 }
 0xa40   :  { %v904_v9 = vmul.f32 %v1308_v6, %v890_v7 }
 0xa42   :  { %911 = vrot.lane.b32.xlu0 %v904_v9, %s1322_s4 }
 0xaab   :  { %v907_v12 = vpop.permute.xlu1 %906 }
 0xaac   :  { %v909_v13 = vsel %vm212_vm4, %v907_v12, %v1698_v27 }
 0xaad   :  { %987 = vrot.lane.b32.xlu2 %v909_v13, %s1322_s4 }
 0xab4   :  { %v912_v15 = vpop.permute.xlu0 %911 }
 0xab5   :  { %v1714_v16 = vsel %vm212_vm4, %v912_v15, %v1691_v24 }
 0xab6   :  { %v915_v17 = vpack.c.bf16 %v1714_v16, %v1714_v16 }
 0xab8   :  { %1176 = vmatmul.msk.bf16.vlgmr.msrb.gmra.mxu2 %vm109_vm0, %v915_v17  ;;  %1177 = vmatmul.msk.bf16.vlgmr.msrb.gmra.mxu3 %vm109_vm0, %v915_v17 }
 0xb07   :  { %v988_v56 = vpop.permute.xlu2 %987 }
 0xb3b   :  { %v928_v20 = vpop.f32.mrf.mxu2  ;;  %v941_v21 = vpop.f32.mrf.mxu3 }
 0xb3c   :  { %v945_v22 = vadd.f32 %v928_v20, %v149_v18  ;;  %v946_v32 = vadd.f32 %v941_v21, %v178_v28 }
 0xb3e   :  { %v1178_v23 = vmul.f32 -1.442695, %v945_v22  ;;  %v1179_v62 = vmul.f32 -1.442695, %v946_v32 }
 0xb40   :  { %1309 = vpow2.f32 %v1178_v23 }
 0xb43   :  { %v930_v25 = vpop.f32.mrf.mxu2  ;;  %v943_v26 = vpop.f32.mrf.mxu3 }
 0xb46   :  { %v1310_v27 = vpop.eup %1309 }
 0xb47   :  { %v950_v24 = vadd.f32 1.0, %v1310_v27 }
 0xb49   :  { %1311 = vrcp.f32 %v950_v24  ;;  %v962_v37 = vand.u32 2147483648, %v950_v24  ;;  %v960_v47 = vand.u32 2147483647, %v950_v24  ;;  %vm956_vm6 = vweird.f32 %v950_v24 }
 0xb4a   :  { %1313 = vtanh.f32 %v946_v32 }
 0xb4b   :  { %v963_v42 = vor.u32 1.1754944e-38, %v962_v37  ;;  %vm961_vm8 = vcmp.eq.f32.partialorder %v960_v47, 8.507059e+37  ;;  %1315 = vpow2.f32 %v1179_v62 }
 0xb4f   :  { %v1312_v29 = vpop.eup %1311 }
 0xb50   :  { %v952_v34 = vmul.f32 %v1312_v29, %v950_v24  ;;  %vm957_vm5 = vweird.f32 %v1312_v29  ;;  %v1314_v33 = vpop.eup %1313 }
 0xb51   :  { %vm958_vm7 = vmor %vm956_vm6, %vm957_vm5  ;;  %v1316_v8 = vpop.eup %1315 }
 0xb52   :  { %v953_v35 = vsub.f32 1.0, %v952_v34  ;;  %v970_v19 = vadd.f32 1.0, %v1316_v8 }
 0xb54   :  { %v954_v51 = vmul.f32 %v1312_v29, %v953_v35  ;;  %1317 = vrcp.f32 %v970_v19  ;;  %v982_v59 = vand.u32 2147483648, %v970_v19  ;;  %vm976_vm10 = vweird.f32 %v970_v19 }
 0xb55   :  { %v980_v41 = vand.u32 2147483647, %v970_v19 }
 0xb56   :  { %v955_v39 = vadd.f32 %v1312_v29, %v954_v51  ;;  %v983_v48 = vor.u32 1.1754944e-38, %v982_v59 }
 0xb57   :  { %vm981_vm12 = vcmp.eq.f32.partialorder %v980_v41, 8.507059e+37 }
 0xb58   :  { %v959_v36 = vsel %vm958_vm7, %v1312_v29, %v955_v39 }
 0xb59   :  { %v964_v43 = vsel %vm961_vm8, %v963_v42, %v959_v36 }
 0xb5a   :  { %v991_v14 = vmul.f32 %v1314_v33, %v964_v43  ;;  %v1318_v38 = vpop.eup %1317  ;;  %v990_v57 = vmul.f32 %v988_v56, %v964_v43 }
 0xb5b   :  { %v972_v30 = vmul.f32 %v1318_v38, %v970_v19  ;;  %vm977_vm9 = vweird.f32 %v1318_v38 }
 0xb5c   :  { %993 = vrot.lane.b32.xlu0 %v991_v14, %s1322_s4  ;;  %vm978_vm11 = vmor %vm976_vm10, %vm977_vm9 }
 0xb5d   :  { %v973_v53 = vsub.f32 1.0, %v972_v30 }
 0xb5f   :  { %v974_v50 = vmul.f32 %v1318_v38, %v973_v53 }
 0xb61   :  { %v975_v58 = vadd.f32 %v1318_v38, %v974_v50 }
 0xb63   :  { %v979_v60 = vsel %vm978_vm11, %v1318_v38, %v975_v58 }
 0xb64   :  { %v984_v63 = vsel %vm981_vm12, %v983_v48, %v979_v60 }
 0xbce   :  { %v994_v54 = vpop.permute.xlu0 %993 }
 0xbcf   :  { %v996_v52 = vadd.f32 %v994_v54, %v990_v57 }
 0xbd1   :  { %1319 = vtanh.f32 %v996_v52 }
 0xbd7   :  { %v1320_v61 = vpop.eup %1319 }
 0xbd8   :  { %v998_v45 = vmul.f32 %v1320_v61, %v984_v63 }
 0xbda   :  { %1000 = vrot.lane.b32.xlu1 %v998_v45, %s1322_s4 }
 0xc4c   :  { %v1001_v2 = vpop.permute.xlu1 %1000 }
 0xc4d   :  { %v1003_v3 = vsel %vm213_vm13, %v1001_v2, %v1714_v16 }
 0xc4e   :  { %v1004_v4 = vpack.c.bf16 %v1003_v3, %v1003_v3 }
 0xc50   :  { %1196 = vmatmul.msk.bf16.vlgmr.msrb.gmra.mxu0 %vm109_vm0, %v1004_v4 }
 0xccd   :  { %v1053_v6 = vpop.f32.mrf.mxu0 }
 0xcce   :  { %v1054_v7 = vadd.f32 %v1224_v5, %v1053_v6 }
 0xcd0   :  { %1057 = vst [vmem:[%s1755_s7] sm:$0xff] %v1054_v7 }
 0xcd5   :  { %v1055_v44 = vpop.f32.mrf.mxu0 }

</bundles_post_ra>
